<compile_context>
chip_gen: v7x
topology: tpu7x:2x2x1
jax: 0.10.0
libtpu: 0.0.40
codegen_flags: <defaults>
</compile_context>

<pallas_src>
from functools import partial

import jax
import jax.numpy as jnp
from jax.experimental import pallas as pl
from jax.experimental.pallas import tpu as pltpu


# ------------------------------ fused kernel --------------------------------

def _encoder_kernel(
    patches_ref, base_ref, patch_w_ref,
    ln1_g_ref, ln1_b_ref, wqkv_ref, bqkv_ref, wo_ref, bo_ref,
    ln2_g_ref, ln2_b_ref, w1_ref, b1_ref, w2_ref, b2_ref,
    lnf_g_ref, lnf_b_ref, pool_w_ref, pool_b_ref,
    out_ref,
    h_ref,
    *, heads, dim, scale, eps, seq_valid,
):
    """One grid step = (batch element b, transformer layer l).

    Token activations stay in the f32 VMEM scratch `h_ref`, carried across the
    (inner, "arbitrary") layer axis. At l == 0 the patch embedding (+CLS+pos)
    is written into the scratch; at the last layer the final LayerNorm +
    pooler (tanh(Linear(CLS))) is written to this batch element's output.
    """
    l = pl.program_id(1)
    n_layers = pl.num_programs(1)
    D = dim
    Dh = D // heads
    f32 = jnp.float32
    bf16 = jnp.bfloat16

    # ---- layer 0: patch embedding + [CLS] + positional embedding ----------
    @pl.when(l == 0)
    def _():
        pe = jnp.dot(patches_ref[0].astype(bf16), patch_w_ref[...],
                     preferred_element_type=f32)            # [S_pad, D]
        # CLS row / padding rows of `patches` are zero; CLS, pos and the patch
        # bias are pre-folded into `base` by the wrapper.
        h_ref[...] = pe + base_ref[...]

    h = h_ref[...]                                           # [S_pad, D] f32
    s_pad = h.shape[0]

    def layernorm(x, g, b):
        mu = jnp.mean(x, axis=-1, keepdims=True)
        var = jnp.mean(jnp.square(x - mu), axis=-1, keepdims=True)
        return (x - mu) * jax.lax.rsqrt(var + eps) * g + b

    # ---- pre-LN multi-head self-attention + O-projection + residual -------
    xn = layernorm(h, ln1_g_ref[0].astype(f32), ln1_b_ref[0].astype(f32))
    qkv = jnp.dot(xn.astype(bf16), wqkv_ref[0],
                  preferred_element_type=f32) + bqkv_ref[0].astype(f32)  # [S_pad, 3D]
    # 128-lane-aligned splits of the fused slab; softmax scale folded into q.
    q = (qkv[:, :D] * scale).astype(bf16)
    k = qkv[:, D:2 * D].astype(bf16)
    v = qkv[:, 2 * D:3 * D].astype(bf16)

    # Padded key positions (>= seq_valid) are masked out of the softmax.
    key_valid = jax.lax.broadcasted_iota(jnp.int32, (s_pad, s_pad), 1) < seq_valid

    ctx_heads = []
    for hd in range(heads):                                  # static, unrolled
        lo, hi = hd * Dh, (hd + 1) * Dh
        qh, kh, vh = q[:, lo:hi], k[:, lo:hi], v[:, lo:hi]
        # q @ k^T without an explicit transpose (contract the last dims).
        s = jax.lax.dot_general(qh, kh, (((1,), (1,)), ((), ())),
                                preferred_element_type=f32)  # [S_pad, S_pad]
        s = jnp.where(key_valid, s, -1e30)
        m = jnp.max(s, axis=-1, keepdims=True)
        p = jnp.exp(s - m)
        denom = jnp.sum(p, axis=-1, keepdims=True)
        p = (p * pl.reciprocal(denom, approx=True)).astype(bf16)
        ctx_heads.append(jnp.dot(p, vh, preferred_element_type=f32))  # [S_pad, Dh]
    ctx = jnp.concatenate(ctx_heads, axis=-1)                # [S_pad, D] f32
    attn = jnp.dot(ctx.astype(bf16), wo_ref[0], preferred_element_type=f32)
    h_attn = attn + bo_ref[0].astype(f32) + h

    # ---- pre-LN MLP (W1 + GELU + W2) + residual ----------------------------
    xn2 = layernorm(h_attn, ln2_g_ref[0].astype(f32), ln2_b_ref[0].astype(f32))
    h1 = jnp.dot(xn2.astype(bf16), w1_ref[0],
                 preferred_element_type=f32) + b1_ref[0].astype(f32)
    # TODO(synk): HF ViT uses exact erf-GELU; tanh approximation used here.
    h1 = jax.nn.gelu(h1, approximate=True)
    h2 = jnp.dot(h1.astype(bf16), w2_ref[0], preferred_element_type=f32)
    h_new = h2 + b2_ref[0].astype(f32) + h_attn
    h_ref[...] = h_new

    # ---- last layer: final LayerNorm + pooler on the CLS row only ----------
    @pl.when(l == n_layers - 1)
    def _():
        cls = h_new[0:1, :]                                  # [1, D]
        cn = layernorm(cls, lnf_g_ref[...].astype(f32), lnf_b_ref[...].astype(f32))
        pooled = jnp.tanh(
            jnp.dot(cn.astype(bf16), pool_w_ref[...], preferred_element_type=f32)
            + pool_b_ref[...].astype(f32))
        out_ref[0] = pooled.astype(out_ref.dtype)


# ---------------------------- Parameter setup -------------------------------

def init_params(key, *, channels, patch, hidden, depth, heads, mlp_dim, img):
    n_patches = (img // patch) ** 2
    seq = n_patches + 1
    patch_dim = channels * patch * patch
    keys = iter(jax.random.split(key, 4 + depth * 4))

    def nrm(shape, dtype=jnp.bfloat16):
        return (0.02 * jax.random.normal(next(keys), shape, jnp.float32)).astype(dtype)

    def stack(make):
        return jnp.stack([make() for _ in range(depth)], axis=0)

    return {
        "patch_w": nrm((patch_dim, hidden)),                       # bf16
        "patch_b": jnp.zeros((hidden,), jnp.float32),
        "cls": nrm((1, 1, hidden), jnp.float32),
        "pos": nrm((1, seq, hidden), jnp.float32),
        "lnf_g": jnp.ones((1, hidden), jnp.float32),
        "lnf_b": jnp.zeros((1, hidden), jnp.float32),
        "pool_w": nrm((hidden, hidden)),                           # bf16
        "pool_b": jnp.zeros((1, hidden), jnp.float32),
        # Per-layer params stacked with a leading depth axis.
        "ln1_g": jnp.ones((depth, 1, hidden), jnp.float32),
        "ln1_b": jnp.zeros((depth, 1, hidden), jnp.float32),
        "wqkv": stack(lambda: nrm((hidden, 3 * hidden))),          # fused Q|K|V, bf16
        "bqkv": jnp.zeros((depth, 1, 3 * hidden), jnp.float32),
        "wo": stack(lambda: nrm((hidden, hidden))),                # bf16
        "bo": jnp.zeros((depth, 1, hidden), jnp.float32),
        "ln2_g": jnp.ones((depth, 1, hidden), jnp.float32),
        "ln2_b": jnp.zeros((depth, 1, hidden), jnp.float32),
        "w1": stack(lambda: nrm((hidden, mlp_dim))),               # bf16
        "b1": jnp.zeros((depth, 1, mlp_dim), jnp.float32),
        "w2": stack(lambda: nrm((mlp_dim, hidden))),               # bf16
        "b2": jnp.zeros((depth, 1, hidden), jnp.float32),
    }


# ------------------------------ Forward pass --------------------------------

def image_encoder_forward(x, params, *, patch, heads, eps=1e-12):
    """x: [B, C, H, W] (NCHW)  ->  pooler_output [B, hidden]."""
    B, C, H, W = x.shape
    D = params["pool_w"].shape[1]
    PD = params["patch_w"].shape[0]
    L = params["wqkv"].shape[0]
    Mh = params["w1"].shape[2]
    nh, nw = H // patch, W // patch
    N = nh * nw
    S = N + 1
    S_pad = ((S + 7) // 8) * 8

    # NCHW -> [B, N, C*patch*patch] patch extraction (pure data movement, done
    # with XLA reshape/transpose in the wrapper). Row 0 (CLS) and padding rows
    # are zero so the in-kernel patch matmul leaves them untouched.
    xp = x.reshape(B, C, nh, patch, nw, patch)
    xp = xp.transpose(0, 2, 4, 1, 3, 5).reshape(B, N, PD)
    patches = jnp.pad(xp, ((0, 0), (1, S_pad - 1 - N), (0, 0)))    # [B, S_pad, PD]

    # CLS token, positional embedding and the patch bias folded into one slab.
    pos = params["pos"][0]                                         # [S, D]
    cls_row = params["cls"].reshape(1, D)
    base = jnp.concatenate(
        [cls_row + pos[:1], pos[1:] + params["patch_b"][None, :]], axis=0)
    base = jnp.pad(base, ((0, S_pad - S), (0, 0)))                 # [S_pad, D]

    scale = 1.0 / float(D // heads) ** 0.5
    kernel = partial(_encoder_kernel, heads=heads, dim=D, scale=scale,
                     eps=eps, seq_valid=S)

    lmap3 = lambda b, l: (l, 0, 0)        # per-layer stacked params
    cmap2 = lambda b, l: (0, 0)           # layer/batch-invariant params

    pooled = pl.pallas_call(
        kernel,
        out_shape=jax.ShapeDtypeStruct((B, 1, D), jnp.float32),
        grid=(B, L),
        in_specs=[
            pl.BlockSpec((1, S_pad, PD), lambda b, l: (b, 0, 0)),  # patches
            pl.BlockSpec((S_pad, D), cmap2),                       # base (cls+pos+bias)
            pl.BlockSpec((PD, D), cmap2),                          # patch_w
            pl.BlockSpec((1, 1, D), lmap3),                        # ln1_g
            pl.BlockSpec((1, 1, D), lmap3),                        # ln1_b
            pl.BlockSpec((1, D, 3 * D), lmap3),                    # wqkv
            pl.BlockSpec((1, 1, 3 * D), lmap3),                    # bqkv
            pl.BlockSpec((1, D, D), lmap3),                        # wo
            pl.BlockSpec((1, 1, D), lmap3),                        # bo
            pl.BlockSpec((1, 1, D), lmap3),                        # ln2_g
            pl.BlockSpec((1, 1, D), lmap3),                        # ln2_b
            pl.BlockSpec((1, D, Mh), lmap3),                       # w1
            pl.BlockSpec((1, 1, Mh), lmap3),                       # b1
            pl.BlockSpec((1, Mh, D), lmap3),                       # w2
            pl.BlockSpec((1, 1, D), lmap3),                        # b2
            pl.BlockSpec((1, D), cmap2),                           # lnf_g
            pl.BlockSpec((1, D), cmap2),                           # lnf_b
            pl.BlockSpec((D, D), cmap2),                           # pool_w
            pl.BlockSpec((1, D), cmap2),                           # pool_b
        ],
        out_specs=pl.BlockSpec((1, 1, D), lambda b, l: (b, 0, 0)),
        scratch_shapes=[pltpu.VMEM((S_pad, D), jnp.float32)],      # resident h
        compiler_params=pltpu.CompilerParams(
            dimension_semantics=("parallel", "arbitrary")),
    )(patches, base, params["patch_w"],
      params["ln1_g"], params["ln1_b"], params["wqkv"], params["bqkv"],
      params["wo"], params["bo"], params["ln2_g"], params["ln2_b"],
      params["w1"], params["b1"], params["w2"], params["b2"],
      params["lnf_g"], params["lnf_b"], params["pool_w"], params["pool_b"])
    return pooled.reshape(B, D)


# ---------------------------------- main -------------------------------------

if __name__ == "__main__":
    B, C, IMG = 2, 3, 16
    PATCH, HIDDEN, DEPTH, HEADS, MLP = 4, 128, 2, 4, 256

    key = jax.random.PRNGKey(0)
    k_x, k_p = jax.random.split(key)
    x = jax.random.normal(k_x, (B, C, IMG, IMG), jnp.float32)
    params = init_params(k_p, channels=C, patch=PATCH, hidden=HIDDEN,
                         depth=DEPTH, heads=HEADS, mlp_dim=MLP, img=IMG)

    fwd = jax.jit(partial(image_encoder_forward, patch=PATCH, heads=HEADS))
    out = jax.block_until_ready(fwd(x, params))
    assert out.shape == (B, HIDDEN), out.shape
    assert bool(jnp.all(jnp.isfinite(out)))
    print("KERNEL_OK")
</pallas_src>

<mosaic_0001>
module attributes {stable_mosaic.version = 11 : i64} {
  func.func @_encoder_kernel(%arg0: i32, %arg1: i32, %arg2: memref<1x24x48xf32, #tpu.memory_space<vmem>>, %arg3: memref<24x128xf32, #tpu.memory_space<vmem>>, %arg4: memref<48x128xbf16, #tpu.memory_space<vmem>>, %arg5: memref<1x1x128xf32, #tpu.memory_space<vmem>>, %arg6: memref<1x1x128xf32, #tpu.memory_space<vmem>>, %arg7: memref<1x128x384xbf16, #tpu.memory_space<vmem>>, %arg8: memref<1x1x384xf32, #tpu.memory_space<vmem>>, %arg9: memref<1x128x128xbf16, #tpu.memory_space<vmem>>, %arg10: memref<1x1x128xf32, #tpu.memory_space<vmem>>, %arg11: memref<1x1x128xf32, #tpu.memory_space<vmem>>, %arg12: memref<1x1x128xf32, #tpu.memory_space<vmem>>, %arg13: memref<1x128x256xbf16, #tpu.memory_space<vmem>>, %arg14: memref<1x1x256xf32, #tpu.memory_space<vmem>>, %arg15: memref<1x256x128xbf16, #tpu.memory_space<vmem>>, %arg16: memref<1x1x128xf32, #tpu.memory_space<vmem>>, %arg17: memref<1x128xf32, #tpu.memory_space<vmem>>, %arg18: memref<1x128xf32, #tpu.memory_space<vmem>>, %arg19: memref<128x128xbf16, #tpu.memory_space<vmem>>, %arg20: memref<1x128xf32, #tpu.memory_space<vmem>>, %arg21: memref<1x1x128xf32, #tpu.memory_space<vmem>>, %arg22: memref<24x128xf32, #tpu.memory_space<vmem>>) attributes {dimension_semantics = [#tpu.dimension_semantics<parallel>, #tpu.dimension_semantics<arbitrary>], iteration_bounds = array<i64: 2, 2>, scalar_prefetch = 0 : i64, scratch_operands = 1 : i64, tpu.core_type = #tpu.core_type<tc>, window_params = [{transform_indices = @transform_0, window_bounds = array<i64: 1, 24, 48>}, {pipeline_mode = #tpu.pipeline_mode<synchronous>, transform_indices = @transform_1, window_bounds = array<i64: 24, 128>}, {pipeline_mode = #tpu.pipeline_mode<synchronous>, transform_indices = @transform_2, window_bounds = array<i64: 48, 128>}, {transform_indices = @transform_3, window_bounds = array<i64: 1, 1, 128>}, {transform_indices = @transform_4, window_bounds = array<i64: 1, 1, 128>}, {transform_indices = @transform_5, window_bounds = array<i64: 1, 128, 384>}, {transform_indices = @transform_6, window_bounds = array<i64: 1, 1, 384>}, {transform_indices = @transform_7, window_bounds = array<i64: 1, 128, 128>}, {transform_indices = @transform_8, window_bounds = array<i64: 1, 1, 128>}, {transform_indices = @transform_9, window_bounds = array<i64: 1, 1, 128>}, {transform_indices = @transform_10, window_bounds = array<i64: 1, 1, 128>}, {transform_indices = @transform_11, window_bounds = array<i64: 1, 128, 256>}, {transform_indices = @transform_12, window_bounds = array<i64: 1, 1, 256>}, {transform_indices = @transform_13, window_bounds = array<i64: 1, 256, 128>}, {transform_indices = @transform_14, window_bounds = array<i64: 1, 1, 128>}, {pipeline_mode = #tpu.pipeline_mode<synchronous>, transform_indices = @transform_15, window_bounds = array<i64: 1, 128>}, {pipeline_mode = #tpu.pipeline_mode<synchronous>, transform_indices = @transform_16, window_bounds = array<i64: 1, 128>}, {pipeline_mode = #tpu.pipeline_mode<synchronous>, transform_indices = @transform_17, window_bounds = array<i64: 128, 128>}, {pipeline_mode = #tpu.pipeline_mode<synchronous>, transform_indices = @transform_18, window_bounds = array<i64: 1, 128>}, {transform_indices = @transform_19, window_bounds = array<i64: 1, 1, 128>}]} {
    %c0_i32 = arith.constant 0 : i32
    %0 = arith.cmpi eq, %arg1, %c0_i32 : i32
    %1 = arith.extui %0 : i1 to i32
    %c0_i32_0 = arith.constant 0 : i32
    %2 = arith.cmpi ne, %1, %c0_i32_0 : i32
    scf.if %2 {
      %c0_79 = arith.constant 0 : index
      %c0_80 = arith.constant 0 : index
      %c0_81 = arith.constant 0 : index
      %191 = vector.load %arg2[%c0_79, %c0_80, %c0_81] : memref<1x24x48xf32, #tpu.memory_space<vmem>>, vector<1x24x48xf32>
      %192 = vector.shape_cast %191 : vector<1x24x48xf32> to vector<24x48xf32>
      %193 = arith.truncf %192 : vector<24x48xf32> to vector<24x48xbf16>
      %c0_82 = arith.constant 0 : index
      %c0_83 = arith.constant 0 : index
      %194 = vector.load %arg4[%c0_82, %c0_83] : memref<48x128xbf16, #tpu.memory_space<vmem>>, vector<48x128xbf16>
      %cst_84 = arith.constant dense<0.000000e+00> : vector<24x128xf32>
      %195 = tpu.matmul %193, %194, %cst_84 {dimension_numbers = #tpu.dot_dimension_numbers<[1], [0], [0], [1], [0, 0, 1, 1], [], []>} : vector<24x48xbf16>, vector<48x128xbf16>, vector<24x128xf32> -> vector<24x128xf32>
      %c0_85 = arith.constant 0 : index
      %c0_86 = arith.constant 0 : index
      %196 = vector.load %arg3[%c0_85, %c0_86] : memref<24x128xf32, #tpu.memory_space<vmem>>, vector<24x128xf32>
      %197 = arith.addf %195, %196 : vector<24x128xf32>
      %c0_87 = arith.constant 0 : index
      %c0_88 = arith.constant 0 : index
      %198 = vector.load %arg22[%c0_87, %c0_88] : memref<24x128xf32, #tpu.memory_space<vmem>>, vector<24x128xf32>
      tpu.vector_store %arg22[%c0_87, %c0_88], %197 {strides = array<i32>} : memref<24x128xf32, #tpu.memory_space<vmem>>, vector<24x128xf32>,
    } else {
    }
    %c0 = arith.constant 0 : index
    %c0_1 = arith.constant 0 : index
    %3 = vector.load %arg22[%c0, %c0_1] : memref<24x128xf32, #tpu.memory_space<vmem>>, vector<24x128xf32>
    %c0_2 = arith.constant 0 : index
    %c0_3 = arith.constant 0 : index
    %c0_4 = arith.constant 0 : index
    %4 = vector.load %arg5[%c0_2, %c0_3, %c0_4] : memref<1x1x128xf32, #tpu.memory_space<vmem>>, vector<1x1x128xf32>
    %5 = vector.shape_cast %4 : vector<1x1x128xf32> to vector<1x128xf32>
    %c0_5 = arith.constant 0 : index
    %c0_6 = arith.constant 0 : index
    %c0_7 = arith.constant 0 : index
    %6 = vector.load %arg6[%c0_5, %c0_6, %c0_7] : memref<1x1x128xf32, #tpu.memory_space<vmem>>, vector<1x1x128xf32>
    %7 = vector.shape_cast %6 : vector<1x1x128xf32> to vector<1x128xf32>
    %cst = arith.constant dense<0.000000e+00> : vector<24xf32>
    %8 = vector.multi_reduction <add>, %3, %cst [1] : vector<24x128xf32> to vector<24xf32>
    %9 = vector.shape_cast %8 : vector<24xf32> to vector<24x1xf32>
    %cst_8 = arith.constant 1.280000e+02 : f32
    %10 = vector.broadcast %cst_8 : f32 to vector<24x1xf32>
    %11 = arith.divf %9, %10 : vector<24x1xf32>
    %12 = vector.broadcast %11 : vector<24x1xf32> to vector<24x128xf32>
    %13 = arith.subf %3, %12 : vector<24x128xf32>
    %14 = arith.mulf %13, %13 : vector<24x128xf32>
    %cst_9 = arith.constant dense<0.000000e+00> : vector<24xf32>
    %15 = vector.multi_reduction <add>, %14, %cst_9 [1] : vector<24x128xf32> to vector<24xf32>
    %16 = vector.shape_cast %15 : vector<24xf32> to vector<24x1xf32>
    %cst_10 = arith.constant 1.280000e+02 : f32
    %17 = vector.broadcast %cst_10 : f32 to vector<24x1xf32>
    %18 = arith.divf %16, %17 : vector<24x1xf32>
    %19 = vector.broadcast %11 : vector<24x1xf32> to vector<24x128xf32>
    %20 = arith.subf %3, %19 : vector<24x128xf32>
    %cst_11 = arith.constant 9.99999996E-13 : f32
    %21 = vector.broadcast %cst_11 : f32 to vector<24x1xf32>
    %22 = arith.addf %18, %21 : vector<24x1xf32>
    %23 = math.rsqrt %22 : vector<24x1xf32>
    %24 = vector.broadcast %23 : vector<24x1xf32> to vector<24x128xf32>
    %25 = arith.mulf %20, %24 : vector<24x128xf32>
    %26 = vector.broadcast %5 : vector<1x128xf32> to vector<24x128xf32>
    %27 = arith.mulf %25, %26 : vector<24x128xf32>
    %28 = vector.broadcast %7 : vector<1x128xf32> to vector<24x128xf32>
    %29 = arith.addf %27, %28 : vector<24x128xf32>
    %30 = arith.truncf %29 : vector<24x128xf32> to vector<24x128xbf16>
    %c0_12 = arith.constant 0 : index
    %c0_13 = arith.constant 0 : index
    %c0_14 = arith.constant 0 : index
    %31 = vector.load %arg7[%c0_12, %c0_13, %c0_14] : memref<1x128x384xbf16, #tpu.memory_space<vmem>>, vector<1x128x384xbf16>
    %32 = vector.shape_cast %31 : vector<1x128x384xbf16> to vector<128x384xbf16>
    %cst_15 = arith.constant dense<0.000000e+00> : vector<24x384xf32>
    %33 = tpu.matmul %30, %32, %cst_15 {dimension_numbers = #tpu.dot_dimension_numbers<[1], [0], [0], [1], [0, 0, 1, 1], [], []>} : vector<24x128xbf16>, vector<128x384xbf16>, vector<24x384xf32> -> vector<24x384xf32>
    %c0_16 = arith.constant 0 : index
    %c0_17 = arith.constant 0 : index
    %c0_18 = arith.constant 0 : index
    %34 = vector.load %arg8[%c0_16, %c0_17, %c0_18] : memref<1x1x384xf32, #tpu.memory_space<vmem>>, vector<1x1x384xf32>
    %35 = vector.shape_cast %34 : vector<1x1x384xf32> to vector<1x384xf32>
    %36 = vector.broadcast %35 : vector<1x384xf32> to vector<24x384xf32>
    %37 = arith.addf %33, %36 : vector<24x384xf32>
    %38 = vector.extract_strided_slice %37 {offsets = [0, 0], sizes = [24, 128], strides = [1, 1]} : vector<24x384xf32> to vector<24x128xf32>
    %cst_19 = arith.constant 0.176776692 : f32
    %39 = vector.broadcast %cst_19 : f32 to vector<24x128xf32>
    %40 = arith.mulf %38, %39 : vector<24x128xf32>
    %41 = arith.truncf %40 : vector<24x128xf32> to vector<24x128xbf16>
    %42 = vector.extract_strided_slice %37 {offsets = [0, 128], sizes = [24, 128], strides = [1, 1]} : vector<24x384xf32> to vector<24x128xf32>
    %43 = arith.truncf %42 : vector<24x128xf32> to vector<24x128xbf16>
    %44 = vector.extract_strided_slice %37 {offsets = [0, 256], sizes = [24, 128], strides = [1, 1]} : vector<24x384xf32> to vector<24x128xf32>
    %45 = arith.truncf %44 : vector<24x128xf32> to vector<24x128xbf16>
    %46 = tpu.iota {dimensions = array<i32: 1>} : vector<24x24xi32>
    %c17_i32 = arith.constant 17 : i32
    %47 = vector.broadcast %c17_i32 : i32 to vector<24x24xi32>
    %48 = arith.cmpi slt, %46, %47 : vector<24x24xi32>
    %49 = vector.extract_strided_slice %41 {offsets = [0, 0], sizes = [24, 32], strides = [1, 1]} : vector<24x128xbf16> to vector<24x32xbf16>
    %50 = vector.extract_strided_slice %43 {offsets = [0, 0], sizes = [24, 32], strides = [1, 1]} : vector<24x128xbf16> to vector<24x32xbf16>
    %51 = vector.extract_strided_slice %45 {offsets = [0, 0], sizes = [24, 32], strides = [1, 1]} : vector<24x128xbf16> to vector<24x32xbf16>
    %cst_20 = arith.constant dense<0.000000e+00> : vector<24x24xf32>
    %52 = tpu.matmul %49, %50, %cst_20 {dimension_numbers = #tpu.dot_dimension_numbers<[1], [1], [0], [0], [0, 0, 1, 0], [], []>} : vector<24x32xbf16>, vector<24x32xbf16>, vector<24x24xf32> -> vector<24x24xf32>
    %cst_21 = arith.constant -1.000000e+30 : f32
    %53 = vector.broadcast %cst_21 : f32 to vector<24x24xf32>
    %54 = arith.select %48, %52, %53 : vector<24x24xi1>, vector<24x24xf32>
    %cst_22 = arith.constant dense<0xFF800000> : vector<24xf32>
    %55 = vector.multi_reduction <maximumf>, %54, %cst_22 [1] : vector<24x24xf32> to vector<24xf32>
    %56 = vector.shape_cast %55 : vector<24xf32> to vector<24x1xf32>
    %57 = vector.broadcast %56 : vector<24x1xf32> to vector<24x24xf32>
    %58 = arith.subf %54, %57 : vector<24x24xf32>
    %59 = math.exp %58 : vector<24x24xf32>
    %cst_23 = arith.constant dense<0.000000e+00> : vector<24xf32>
    %60 = vector.multi_reduction <add>, %59, %cst_23 [1] : vector<24x24xf32> to vector<24xf32>
    %61 = vector.shape_cast %60 : vector<24xf32> to vector<24x1xf32>
    %62 = tpu.reciprocal %61 {approx = true} : vector<24x1xf32> -> vector<24x1xf32>
    %63 = vector.broadcast %62 : vector<24x1xf32> to vector<24x24xf32>
    %64 = arith.mulf %59, %63 : vector<24x24xf32>
    %65 = arith.truncf %64 : vector<24x24xf32> to vector<24x24xbf16>
    %cst_24 = arith.constant dense<0.000000e+00> : vector<24x32xf32>
    %66 = tpu.matmul %65, %51, %cst_24 {dimension_numbers = #tpu.dot_dimension_numbers<[1], [0], [0], [1], [0, 0, 1, 1], [], []>} : vector<24x24xbf16>, vector<24x32xbf16>, vector<24x32xf32> -> vector<24x32xf32>
    %67 = vector.extract_strided_slice %41 {offsets = [0, 32], sizes = [24, 32], strides = [1, 1]} : vector<24x128xbf16> to vector<24x32xbf16>
    %68 = vector.extract_strided_slice %43 {offsets = [0, 32], sizes = [24, 32], strides = [1, 1]} : vector<24x128xbf16> to vector<24x32xbf16>
    %69 = vector.extract_strided_slice %45 {offsets = [0, 32], sizes = [24, 32], strides = [1, 1]} : vector<24x128xbf16> to vector<24x32xbf16>
    %cst_25 = arith.constant dense<0.000000e+00> : vector<24x24xf32>
    %70 = tpu.matmul %67, %68, %cst_25 {dimension_numbers = #tpu.dot_dimension_numbers<[1], [1], [0], [0], [0, 0, 1, 0], [], []>} : vector<24x32xbf16>, vector<24x32xbf16>, vector<24x24xf32> -> vector<24x24xf32>
    %cst_26 = arith.constant -1.000000e+30 : f32
    %71 = vector.broadcast %cst_26 : f32 to vector<24x24xf32>
    %72 = arith.select %48, %70, %71 : vector<24x24xi1>, vector<24x24xf32>
    %cst_27 = arith.constant dense<0xFF800000> : vector<24xf32>
    %73 = vector.multi_reduction <maximumf>, %72, %cst_27 [1] : vector<24x24xf32> to vector<24xf32>
    %74 = vector.shape_cast %73 : vector<24xf32> to vector<24x1xf32>
    %75 = vector.broadcast %74 : vector<24x1xf32> to vector<24x24xf32>
    %76 = arith.subf %72, %75 : vector<24x24xf32>
    %77 = math.exp %76 : vector<24x24xf32>
    %cst_28 = arith.constant dense<0.000000e+00> : vector<24xf32>
    %78 = vector.multi_reduction <add>, %77, %cst_28 [1] : vector<24x24xf32> to vector<24xf32>
    %79 = vector.shape_cast %78 : vector<24xf32> to vector<24x1xf32>
    %80 = tpu.reciprocal %79 {approx = true} : vector<24x1xf32> -> vector<24x1xf32>
    %81 = vector.broadcast %80 : vector<24x1xf32> to vector<24x24xf32>
    %82 = arith.mulf %77, %81 : vector<24x24xf32>
    %83 = arith.truncf %82 : vector<24x24xf32> to vector<24x24xbf16>
    %cst_29 = arith.constant dense<0.000000e+00> : vector<24x32xf32>
    %84 = tpu.matmul %83, %69, %cst_29 {dimension_numbers = #tpu.dot_dimension_numbers<[1], [0], [0], [1], [0, 0, 1, 1], [], []>} : vector<24x24xbf16>, vector<24x32xbf16>, vector<24x32xf32> -> vector<24x32xf32>
    %85 = vector.extract_strided_slice %41 {offsets = [0, 64], sizes = [24, 32], strides = [1, 1]} : vector<24x128xbf16> to vector<24x32xbf16>
    %86 = vector.extract_strided_slice %43 {offsets = [0, 64], sizes = [24, 32], strides = [1, 1]} : vector<24x128xbf16> to vector<24x32xbf16>
    %87 = vector.extract_strided_slice %45 {offsets = [0, 64], sizes = [24, 32], strides = [1, 1]} : vector<24x128xbf16> to vector<24x32xbf16>
    %cst_30 = arith.constant dense<0.000000e+00> : vector<24x24xf32>
    %88 = tpu.matmul %85, %86, %cst_30 {dimension_numbers = #tpu.dot_dimension_numbers<[1], [1], [0], [0], [0, 0, 1, 0], [], []>} : vector<24x32xbf16>, vector<24x32xbf16>, vector<24x24xf32> -> vector<24x24xf32>
    %cst_31 = arith.constant -1.000000e+30 : f32
    %89 = vector.broadcast %cst_31 : f32 to vector<24x24xf32>
    %90 = arith.select %48, %88, %89 : vector<24x24xi1>, vector<24x24xf32>
    %cst_32 = arith.constant dense<0xFF800000> : vector<24xf32>
    %91 = vector.multi_reduction <maximumf>, %90, %cst_32 [1] : vector<24x24xf32> to vector<24xf32>
    %92 = vector.shape_cast %91 : vector<24xf32> to vector<24x1xf32>
    %93 = vector.broadcast %92 : vector<24x1xf32> to vector<24x24xf32>
    %94 = arith.subf %90, %93 : vector<24x24xf32>
    %95 = math.exp %94 : vector<24x24xf32>
    %cst_33 = arith.constant dense<0.000000e+00> : vector<24xf32>
    %96 = vector.multi_reduction <add>, %95, %cst_33 [1] : vector<24x24xf32> to vector<24xf32>
    %97 = vector.shape_cast %96 : vector<24xf32> to vector<24x1xf32>
    %98 = tpu.reciprocal %97 {approx = true} : vector<24x1xf32> -> vector<24x1xf32>
    %99 = vector.broadcast %98 : vector<24x1xf32> to vector<24x24xf32>
    %100 = arith.mulf %95, %99 : vector<24x24xf32>
    %101 = arith.truncf %100 : vector<24x24xf32> to vector<24x24xbf16>
    %cst_34 = arith.constant dense<0.000000e+00> : vector<24x32xf32>
    %102 = tpu.matmul %101, %87, %cst_34 {dimension_numbers = #tpu.dot_dimension_numbers<[1], [0], [0], [1], [0, 0, 1, 1], [], []>} : vector<24x24xbf16>, vector<24x32xbf16>, vector<24x32xf32> -> vector<24x32xf32>
    %103 = vector.extract_strided_slice %41 {offsets = [0, 96], sizes = [24, 32], strides = [1, 1]} : vector<24x128xbf16> to vector<24x32xbf16>
    %104 = vector.extract_strided_slice %43 {offsets = [0, 96], sizes = [24, 32], strides = [1, 1]} : vector<24x128xbf16> to vector<24x32xbf16>
    %105 = vector.extract_strided_slice %45 {offsets = [0, 96], sizes = [24, 32], strides = [1, 1]} : vector<24x128xbf16> to vector<24x32xbf16>
    %cst_35 = arith.constant dense<0.000000e+00> : vector<24x24xf32>
    %106 = tpu.matmul %103, %104, %cst_35 {dimension_numbers = #tpu.dot_dimension_numbers<[1], [1], [0], [0], [0, 0, 1, 0], [], []>} : vector<24x32xbf16>, vector<24x32xbf16>, vector<24x24xf32> -> vector<24x24xf32>
    %cst_36 = arith.constant -1.000000e+30 : f32
    %107 = vector.broadcast %cst_36 : f32 to vector<24x24xf32>
    %108 = arith.select %48, %106, %107 : vector<24x24xi1>, vector<24x24xf32>
    %cst_37 = arith.constant dense<0xFF800000> : vector<24xf32>
    %109 = vector.multi_reduction <maximumf>, %108, %cst_37 [1] : vector<24x24xf32> to vector<24xf32>
    %110 = vector.shape_cast %109 : vector<24xf32> to vector<24x1xf32>
    %111 = vector.broadcast %110 : vector<24x1xf32> to vector<24x24xf32>
    %112 = arith.subf %108, %111 : vector<24x24xf32>
    %113 = math.exp %112 : vector<24x24xf32>
    %cst_38 = arith.constant dense<0.000000e+00> : vector<24xf32>
    %114 = vector.multi_reduction <add>, %113, %cst_38 [1] : vector<24x24xf32> to vector<24xf32>
    %115 = vector.shape_cast %114 : vector<24xf32> to vector<24x1xf32>
    %116 = tpu.reciprocal %115 {approx = true} : vector<24x1xf32> -> vector<24x1xf32>
    %117 = vector.broadcast %116 : vector<24x1xf32> to vector<24x24xf32>
    %118 = arith.mulf %113, %117 : vector<24x24xf32>
    %119 = arith.truncf %118 : vector<24x24xf32> to vector<24x24xbf16>
    %cst_39 = arith.constant dense<0.000000e+00> : vector<24x32xf32>
    %120 = tpu.matmul %119, %105, %cst_39 {dimension_numbers = #tpu.dot_dimension_numbers<[1], [0], [0], [1], [0, 0, 1, 1], [], []>} : vector<24x24xbf16>, vector<24x32xbf16>, vector<24x32xf32> -> vector<24x32xf32>
    %121 = tpu.concatenate %66, %84, %102, %120 in 1 : vector<24x32xf32>, vector<24x32xf32>, vector<24x32xf32>, vector<24x32xf32> -> vector<24x128xf32>
    %122 = arith.truncf %121 : vector<24x128xf32> to vector<24x128xbf16>
    %c0_40 = arith.constant 0 : index
    %c0_41 = arith.constant 0 : index
    %c0_42 = arith.constant 0 : index
    %123 = vector.load %arg9[%c0_40, %c0_41, %c0_42] : memref<1x128x128xbf16, #tpu.memory_space<vmem>>, vector<1x128x128xbf16>
    %124 = vector.shape_cast %123 : vector<1x128x128xbf16> to vector<128x128xbf16>
    %cst_43 = arith.constant dense<0.000000e+00> : vector<24x128xf32>
    %125 = tpu.matmul %122, %124, %cst_43 {dimension_numbers = #tpu.dot_dimension_numbers<[1], [0], [0], [1], [0, 0, 1, 1], [], []>} : vector<24x128xbf16>, vector<128x128xbf16>, vector<24x128xf32> -> vector<24x128xf32>
    %c0_44 = arith.constant 0 : index
    %c0_45 = arith.constant 0 : index
    %c0_46 = arith.constant 0 : index
    %126 = vector.load %arg10[%c0_44, %c0_45, %c0_46] : memref<1x1x128xf32, #tpu.memory_space<vmem>>, vector<1x1x128xf32>
    %127 = vector.shape_cast %126 : vector<1x1x128xf32> to vector<1x128xf32>
    %128 = vector.broadcast %127 : vector<1x128xf32> to vector<24x128xf32>
    %129 = arith.addf %125, %128 : vector<24x128xf32>
    %130 = arith.addf %129, %3 : vector<24x128xf32>
    %c0_47 = arith.constant 0 : index
    %c0_48 = arith.constant 0 : index
    %c0_49 = arith.constant 0 : index
    %131 = vector.load %arg11[%c0_47, %c0_48, %c0_49] : memref<1x1x128xf32, #tpu.memory_space<vmem>>, vector<1x1x128xf32>
    %132 = vector.shape_cast %131 : vector<1x1x128xf32> to vector<1x128xf32>
    %c0_50 = arith.constant 0 : index
    %c0_51 = arith.constant 0 : index
    %c0_52 = arith.constant 0 : index
    %133 = vector.load %arg12[%c0_50, %c0_51, %c0_52] : memref<1x1x128xf32, #tpu.memory_space<vmem>>, vector<1x1x128xf32>
    %134 = vector.shape_cast %133 : vector<1x1x128xf32> to vector<1x128xf32>
    %cst_53 = arith.constant dense<0.000000e+00> : vector<24xf32>
    %135 = vector.multi_reduction <add>, %130, %cst_53 [1] : vector<24x128xf32> to vector<24xf32>
    %136 = vector.shape_cast %135 : vector<24xf32> to vector<24x1xf32>
    %cst_54 = arith.constant 1.280000e+02 : f32
    %137 = vector.broadcast %cst_54 : f32 to vector<24x1xf32>
    %138 = arith.divf %136, %137 : vector<24x1xf32>
    %139 = vector.broadcast %138 : vector<24x1xf32> to vector<24x128xf32>
    %140 = arith.subf %130, %139 : vector<24x128xf32>
    %141 = arith.mulf %140, %140 : vector<24x128xf32>
    %cst_55 = arith.constant dense<0.000000e+00> : vector<24xf32>
    %142 = vector.multi_reduction <add>, %141, %cst_55 [1] : vector<24x128xf32> to vector<24xf32>
    %143 = vector.shape_cast %142 : vector<24xf32> to vector<24x1xf32>
    %cst_56 = arith.constant 1.280000e+02 : f32
    %144 = vector.broadcast %cst_56 : f32 to vector<24x1xf32>
    %145 = arith.divf %143, %144 : vector<24x1xf32>
    %146 = vector.broadcast %138 : vector<24x1xf32> to vector<24x128xf32>
    %147 = arith.subf %130, %146 : vector<24x128xf32>
    %cst_57 = arith.constant 9.99999996E-13 : f32
    %148 = vector.broadcast %cst_57 : f32 to vector<24x1xf32>
    %149 = arith.addf %145, %148 : vector<24x1xf32>
    %150 = math.rsqrt %149 : vector<24x1xf32>
    %151 = vector.broadcast %150 : vector<24x1xf32> to vector<24x128xf32>
    %152 = arith.mulf %147, %151 : vector<24x128xf32>
    %153 = vector.broadcast %132 : vector<1x128xf32> to vector<24x128xf32>
    %154 = arith.mulf %152, %153 : vector<24x128xf32>
    %155 = vector.broadcast %134 : vector<1x128xf32> to vector<24x128xf32>
    %156 = arith.addf %154, %155 : vector<24x128xf32>
    %157 = arith.truncf %156 : vector<24x128xf32> to vector<24x128xbf16>
    %c0_58 = arith.constant 0 : index
    %c0_59 = arith.constant 0 : index
    %c0_60 = arith.constant 0 : index
    %158 = vector.load %arg13[%c0_58, %c0_59, %c0_60] : memref<1x128x256xbf16, #tpu.memory_space<vmem>>, vector<1x128x256xbf16>
    %159 = vector.shape_cast %158 : vector<1x128x256xbf16> to vector<128x256xbf16>
    %cst_61 = arith.constant dense<0.000000e+00> : vector<24x256xf32>
    %160 = tpu.matmul %157, %159, %cst_61 {dimension_numbers = #tpu.dot_dimension_numbers<[1], [0], [0], [1], [0, 0, 1, 1], [], []>} : vector<24x128xbf16>, vector<128x256xbf16>, vector<24x256xf32> -> vector<24x256xf32>
    %c0_62 = arith.constant 0 : index
    %c0_63 = arith.constant 0 : index
    %c0_64 = arith.constant 0 : index
    %161 = vector.load %arg14[%c0_62, %c0_63, %c0_64] : memref<1x1x256xf32, #tpu.memory_space<vmem>>, vector<1x1x256xf32>
    %162 = vector.shape_cast %161 : vector<1x1x256xf32> to vector<1x256xf32>
    %163 = vector.broadcast %162 : vector<1x256xf32> to vector<24x256xf32>
    %164 = arith.addf %160, %163 : vector<24x256xf32>
    %165 = arith.mulf %164, %164 : vector<24x256xf32>
    %166 = arith.mulf %164, %165 : vector<24x256xf32>
    %cst_65 = arith.constant 4.471500e-02 : f32
    %167 = vector.broadcast %cst_65 : f32 to vector<24x256xf32>
    %168 = arith.mulf %167, %166 : vector<24x256xf32>
    %169 = arith.addf %164, %168 : vector<24x256xf32>
    %cst_66 = arith.constant 0.797884583 : f32
    %170 = vector.broadcast %cst_66 : f32 to vector<24x256xf32>
    %171 = arith.mulf %170, %169 : vector<24x256xf32>
    %172 = math.tanh %171 : vector<24x256xf32>
    %cst_67 = arith.constant 1.000000e+00 : f32
    %173 = vector.broadcast %cst_67 : f32 to vector<24x256xf32>
    %174 = arith.addf %173, %172 : vector<24x256xf32>
    %cst_68 = arith.constant 5.000000e-01 : f32
    %175 = vector.broadcast %cst_68 : f32 to vector<24x256xf32>
    %176 = arith.mulf %175, %174 : vector<24x256xf32>
    %177 = arith.mulf %164, %176 : vector<24x256xf32>
    %178 = arith.truncf %177 : vector<24x256xf32> to vector<24x256xbf16>
    %c0_69 = arith.constant 0 : index
    %c0_70 = arith.constant 0 : index
    %c0_71 = arith.constant 0 : index
    %179 = vector.load %arg15[%c0_69, %c0_70, %c0_71] : memref<1x256x128xbf16, #tpu.memory_space<vmem>>, vector<1x256x128xbf16>
    %180 = vector.shape_cast %179 : vector<1x256x128xbf16> to vector<256x128xbf16>
    %cst_72 = arith.constant dense<0.000000e+00> : vector<24x128xf32>
    %181 = tpu.matmul %178, %180, %cst_72 {dimension_numbers = #tpu.dot_dimension_numbers<[1], [0], [0], [1], [0, 0, 1, 1], [], []>} : vector<24x256xbf16>, vector<256x128xbf16>, vector<24x128xf32> -> vector<24x128xf32>
    %c0_73 = arith.constant 0 : index
    %c0_74 = arith.constant 0 : index
    %c0_75 = arith.constant 0 : index
    %182 = vector.load %arg16[%c0_73, %c0_74, %c0_75] : memref<1x1x128xf32, #tpu.memory_space<vmem>>, vector<1x1x128xf32>
    %183 = vector.shape_cast %182 : vector<1x1x128xf32> to vector<1x128xf32>
    %184 = vector.broadcast %183 : vector<1x128xf32> to vector<24x128xf32>
    %185 = arith.addf %181, %184 : vector<24x128xf32>
    %186 = arith.addf %185, %130 : vector<24x128xf32>
    %c0_76 = arith.constant 0 : index
    %c0_77 = arith.constant 0 : index
    %187 = vector.load %arg22[%c0_76, %c0_77] : memref<24x128xf32, #tpu.memory_space<vmem>>, vector<24x128xf32>
    tpu.vector_store %arg22[%c0_76, %c0_77], %186 {strides = array<i32>} : memref<24x128xf32, #tpu.memory_space<vmem>>, vector<24x128xf32>,
    %c1_i32 = arith.constant 1 : i32
    %188 = arith.cmpi eq, %arg1, %c1_i32 : i32
    %189 = arith.extui %188 : i1 to i32
    %c0_i32_78 = arith.constant 0 : i32
    %190 = arith.cmpi ne, %189, %c0_i32_78 : i32
    scf.if %190 {
      %191 = vector.extract_strided_slice %186 {offsets = [0, 0], sizes = [1, 128], strides = [1, 1]} : vector<24x128xf32> to vector<1x128xf32>
      %c0_79 = arith.constant 0 : index
      %c0_80 = arith.constant 0 : index
      %192 = vector.load %arg17[%c0_79, %c0_80] : memref<1x128xf32, #tpu.memory_space<vmem>>, vector<1x128xf32>
      %c0_81 = arith.constant 0 : index
      %c0_82 = arith.constant 0 : index
      %193 = vector.load %arg18[%c0_81, %c0_82] : memref<1x128xf32, #tpu.memory_space<vmem>>, vector<1x128xf32>
      %cst_83 = arith.constant dense<0.000000e+00> : vector<1xf32>
      %194 = vector.multi_reduction <add>, %191, %cst_83 [1] : vector<1x128xf32> to vector<1xf32>
      %195 = vector.shape_cast %194 : vector<1xf32> to vector<1x1xf32>
      %cst_84 = arith.constant 1.280000e+02 : f32
      %196 = vector.broadcast %cst_84 : f32 to vector<1x1xf32>
      %197 = arith.divf %195, %196 : vector<1x1xf32>
      %198 = vector.broadcast %197 : vector<1x1xf32> to vector<1x128xf32>
      %199 = arith.subf %191, %198 : vector<1x128xf32>
      %200 = arith.mulf %199, %199 : vector<1x128xf32>
      %cst_85 = arith.constant dense<0.000000e+00> : vector<1xf32>
      %201 = vector.multi_reduction <add>, %200, %cst_85 [1] : vector<1x128xf32> to vector<1xf32>
      %202 = vector.shape_cast %201 : vector<1xf32> to vector<1x1xf32>
      %cst_86 = arith.constant 1.280000e+02 : f32
      %203 = vector.broadcast %cst_86 : f32 to vector<1x1xf32>
      %204 = arith.divf %202, %203 : vector<1x1xf32>
      %205 = vector.broadcast %197 : vector<1x1xf32> to vector<1x128xf32>
      %206 = arith.subf %191, %205 : vector<1x128xf32>
      %cst_87 = arith.constant 9.99999996E-13 : f32
      %207 = vector.broadcast %cst_87 : f32 to vector<1x1xf32>
      %208 = arith.addf %204, %207 : vector<1x1xf32>
      %209 = math.rsqrt %208 : vector<1x1xf32>
      %210 = vector.broadcast %209 : vector<1x1xf32> to vector<1x128xf32>
      %211 = arith.mulf %206, %210 : vector<1x128xf32>
      %212 = arith.mulf %211, %192 : vector<1x128xf32>
      %213 = arith.addf %212, %193 : vector<1x128xf32>
      %214 = arith.truncf %213 : vector<1x128xf32> to vector<1x128xbf16>
      %c0_88 = arith.constant 0 : index
      %c0_89 = arith.constant 0 : index
      %215 = vector.load %arg19[%c0_88, %c0_89] : memref<128x128xbf16, #tpu.memory_space<vmem>>, vector<128x128xbf16>
      %cst_90 = arith.constant dense<0.000000e+00> : vector<1x128xf32>
      %216 = tpu.matmul %214, %215, %cst_90 {dimension_numbers = #tpu.dot_dimension_numbers<[1], [0], [0], [1], [0, 0, 1, 1], [], []>} : vector<1x128xbf16>, vector<128x128xbf16>, vector<1x128xf32> -> vector<1x128xf32>
      %c0_91 = arith.constant 0 : index
      %c0_92 = arith.constant 0 : index
      %217 = vector.load %arg20[%c0_91, %c0_92] : memref<1x128xf32, #tpu.memory_space<vmem>>, vector<1x128xf32>
      %218 = arith.addf %216, %217 : vector<1x128xf32>
      %219 = math.tanh %218 : vector<1x128xf32>
      %c0_93 = arith.constant 0 : index
      %c0_94 = arith.constant 0 : index
      %c0_95 = arith.constant 0 : index
      %220 = vector.load %arg21[%c0_93, %c0_94, %c0_95] : memref<1x1x128xf32, #tpu.memory_space<vmem>>, vector<1x1x128xf32>
      %221 = vector.shape_cast %220 : vector<1x1x128xf32> to vector<1x128xf32>
      %222 = vector.shape_cast %219 : vector<1x128xf32> to vector<1x1x128xf32>
      tpu.vector_store %arg21[%c0_93, %c0_94, %c0_95], %222 {strides = array<i32>} : memref<1x1x128xf32, #tpu.memory_space<vmem>>, vector<1x1x128xf32>,
    } else {
    }
    return
  }
  func.func @transform_0(%arg0: i32, %arg1: i32) -> (i32, i32, i32) {
    %c0_i32 = arith.constant 0 : i32
    %c0_i32_0 = arith.constant 0 : i32
    %c0_i32_1 = arith.constant 0 : i32
    return %arg0, %c0_i32, %c0_i32_0 : i32, i32, i32
  }
  func.func @transform_1(%arg0: i32, %arg1: i32) -> (i32, i32) {
    %c0_i32 = arith.constant 0 : i32
    %c0_i32_0 = arith.constant 0 : i32
    %c0_i32_1 = arith.constant 0 : i32
    return %c0_i32, %c0_i32_0 : i32, i32
  }
  func.func @transform_2(%arg0: i32, %arg1: i32) -> (i32, i32) {
    %c0_i32 = arith.constant 0 : i32
    %c0_i32_0 = arith.constant 0 : i32
    %c0_i32_1 = arith.constant 0 : i32
    return %c0_i32, %c0_i32_0 : i32, i32
  }
  func.func @transform_3(%arg0: i32, %arg1: i32) -> (i32, i32, i32) {
    %c0_i32 = arith.constant 0 : i32
    %c0_i32_0 = arith.constant 0 : i32
    %c0_i32_1 = arith.constant 0 : i32
    return %arg1, %c0_i32, %c0_i32_0 : i32, i32, i32
  }
  func.func @transform_4(%arg0: i32, %arg1: i32) -> (i32, i32, i32) {
    %c0_i32 = arith.constant 0 : i32
    %c0_i32_0 = arith.constant 0 : i32
    %c0_i32_1 = arith.constant 0 : i32
    return %arg1, %c0_i32, %c0_i32_0 : i32, i32, i32
  }
  func.func @transform_5(%arg0: i32, %arg1: i32) -> (i32, i32, i32) {
    %c0_i32 = arith.constant 0 : i32
    %c0_i32_0 = arith.constant 0 : i32
    %c0_i32_1 = arith.constant 0 : i32
    return %arg1, %c0_i32, %c0_i32_0 : i32, i32, i32
  }
  func.func @transform_6(%arg0: i32, %arg1: i32) -> (i32, i32, i32) {
    %c0_i32 = arith.constant 0 : i32
    %c0_i32_0 = arith.constant 0 : i32
    %c0_i32_1 = arith.constant 0 : i32
    return %arg1, %c0_i32, %c0_i32_0 : i32, i32, i32
  }
  func.func @transform_7(%arg0: i32, %arg1: i32) -> (i32, i32, i32) {
    %c0_i32 = arith.constant 0 : i32
    %c0_i32_0 = arith.constant 0 : i32
    %c0_i32_1 = arith.constant 0 : i32
    return %arg1, %c0_i32, %c0_i32_0 : i32, i32, i32
  }
  func.func @transform_8(%arg0: i32, %arg1: i32) -> (i32, i32, i32) {
    %c0_i32 = arith.constant 0 : i32
    %c0_i32_0 = arith.constant 0 : i32
    %c0_i32_1 = arith.constant 0 : i32
    return %arg1, %c0_i32, %c0_i32_0 : i32, i32, i32
  }
  func.func @transform_9(%arg0: i32, %arg1: i32) -> (i32, i32, i32) {
    %c0_i32 = arith.constant 0 : i32
    %c0_i32_0 = arith.constant 0 : i32
    %c0_i32_1 = arith.constant 0 : i32
    return %arg1, %c0_i32, %c0_i32_0 : i32, i32, i32
  }
  func.func @transform_10(%arg0: i32, %arg1: i32) -> (i32, i32, i32) {
    %c0_i32 = arith.constant 0 : i32
    %c0_i32_0 = arith.constant 0 : i32
    %c0_i32_1 = arith.constant 0 : i32
    return %arg1, %c0_i32, %c0_i32_0 : i32, i32, i32
  }
  func.func @transform_11(%arg0: i32, %arg1: i32) -> (i32, i32, i32) {
    %c0_i32 = arith.constant 0 : i32
    %c0_i32_0 = arith.constant 0 : i32
    %c0_i32_1 = arith.constant 0 : i32
    return %arg1, %c0_i32, %c0_i32_0 : i32, i32, i32
  }
  func.func @transform_12(%arg0: i32, %arg1: i32) -> (i32, i32, i32) {
    %c0_i32 = arith.constant 0 : i32
    %c0_i32_0 = arith.constant 0 : i32
    %c0_i32_1 = arith.constant 0 : i32
    return %arg1, %c0_i32, %c0_i32_0 : i32, i32, i32
  }
  func.func @transform_13(%arg0: i32, %arg1: i32) -> (i32, i32, i32) {
    %c0_i32 = arith.constant 0 : i32
    %c0_i32_0 = arith.constant 0 : i32
    %c0_i32_1 = arith.constant 0 : i32
    return %arg1, %c0_i32, %c0_i32_0 : i32, i32, i32
  }
  func.func @transform_14(%arg0: i32, %arg1: i32) -> (i32, i32, i32) {
    %c0_i32 = arith.constant 0 : i32
    %c0_i32_0 = arith.constant 0 : i32
    %c0_i32_1 = arith.constant 0 : i32
    return %arg1, %c0_i32, %c0_i32_0 : i32, i32, i32
  }
  func.func @transform_15(%arg0: i32, %arg1: i32) -> (i32, i32) {
    %c0_i32 = arith.constant 0 : i32
    %c0_i32_0 = arith.constant 0 : i32
    %c0_i32_1 = arith.constant 0 : i32
    return %c0_i32, %c0_i32_0 : i32, i32
  }
  func.func @transform_16(%arg0: i32, %arg1: i32) -> (i32, i32) {
    %c0_i32 = arith.constant 0 : i32
    %c0_i32_0 = arith.constant 0 : i32
    %c0_i32_1 = arith.constant 0 : i32
    return %c0_i32, %c0_i32_0 : i32, i32
  }
  func.func @transform_17(%arg0: i32, %arg1: i32) -> (i32, i32) {
    %c0_i32 = arith.constant 0 : i32
    %c0_i32_0 = arith.constant 0 : i32
    %c0_i32_1 = arith.constant 0 : i32
    return %c0_i32, %c0_i32_0 : i32, i32
  }
  func.func @transform_18(%arg0: i32, %arg1: i32) -> (i32, i32) {
    %c0_i32 = arith.constant 0 : i32
    %c0_i32_0 = arith.constant 0 : i32
    %c0_i32_1 = arith.constant 0 : i32
    return %c0_i32, %c0_i32_0 : i32, i32
  }
  func.func @transform_19(%arg0: i32, %arg1: i32) -> (i32, i32, i32) {
    %c0_i32 = arith.constant 0 : i32
    %c0_i32_0 = arith.constant 0 : i32
    %c0_i32_1 = arith.constant 0 : i32
    return %arg0, %c0_i32, %c0_i32_0 : i32, i32, i32
  }
}

</mosaic_0001>

<bundles_post_ra>
// kernel: image_encoder_forward.1
= control target key start
LH: loop header
LB: loop body
LE: loop exit
PB: predicated region body
PF: predicated region fallthrough
CT: control target
= control target key end

     0   :  { %s4296_s0 = inlined_call_operand.vmem [shape: f32[2,24,48], index: 0, kind: input, shape index: {}]   ;;  %s4297_s1 = inlined_call_operand.vmem [shape: f32[24,128], index: 1, kind: input, shape index: {}]   ;;  %s4298_s2 = inlined_call_operand.vmem [shape: bf16[48,128], index: 2, kind: input, shape index: {}]   ;;  %s4299_s3 = inlined_call_operand.vmem [shape: f32[2,1,128], index: 3, kind: input, shape index: {}]   ;;  %s4300_s4 = inlined_call_operand.vmem [shape: f32[2,1,128], index: 4, kind: input, shape index: {}]   ;;  %s4301_s5 = inlined_call_operand.vmem [shape: bf16[2,128,384], index: 5, kind: input, shape index: {}]   ;;  %s4302_s6 = inlined_call_operand.vmem [shape: f32[2,1,384], index: 6, kind: input, shape index: {}]   ;;  %s4303_s7 = inlined_call_operand.vmem [shape: bf16[2,128,128], index: 7, kind: input, shape index: {}]   ;;  %s4304_s8 = inlined_call_operand.vmem [shape: f32[2,1,128], index: 8, kind: input, shape index: {}]   ;;  %s4305_s9 = inlined_call_operand.vmem [shape: f32[2,1,128], index: 9, kind: input, shape index: {}]   ;;  %s4306_s10 = inlined_call_operand.vmem [shape: f32[2,1,128], index: 10, kind: input, shape index: {}]   ;;  %s4307_s11 = inlined_call_operand.vmem [shape: bf16[2,128,256], index: 11, kind: input, shape index: {}]   ;;  %s4308_s12 = inlined_call_operand.vmem [shape: f32[2,1,256], index: 12, kind: input, shape index: {}]   ;;  %s4309_s13 = inlined_call_operand.vmem [shape: bf16[2,256,128], index: 13, kind: input, shape index: {}]   ;;  %s4310_s14 = inlined_call_operand.vmem [shape: f32[2,1,128], index: 14, kind: input, shape index: {}]   ;;  %s4311_s15 = inlined_call_operand.vmem [shape: f32[1,128], index: 15, kind: input, shape index: {}]   ;;  %s4312_s16 = inlined_call_operand.vmem [shape: f32[1,128], index: 16, kind: input, shape index: {}]   ;;  %s4313_s17 = inlined_call_operand.vmem [shape: bf16[128,128], index: 17, kind: input, shape index: {}]   ;;  %s4314_s18 = inlined_call_operand.vmem [shape: f32[1,128], index: 18, kind: input, shape index: {}]   ;;  %s4315_s19 = inlined_call_operand.hbm [shape: f32[2,1,128], index: 19, kind: output, shape index: {}]  }
   0x1   :  { %4332 = sst [smem:[#allocation18_spill]] %s4296_s0 }
   0x2   :  { %4333 = sst [smem:[#allocation19_spill]] %s4297_s1 }
   0x3   :  { %4334 = sst [smem:[#allocation20_spill]] %s4298_s2 }
   0x4   :  { %4335 = sst [smem:[#allocation21_spill]] %s4299_s3 }
   0x5   :  { %4336 = sst [smem:[#allocation22_spill]] %s4301_s5 }
   0x6   :  { %4337 = sst [smem:[#allocation23_spill]] %s4302_s6 }
   0x7   :  { %4338 = sst [smem:[#allocation24_spill]] %s4303_s7 }
   0x8   :  { %4339 = sst [smem:[#allocation25_spill]] %s4311_s15 }
   0x9   :  { %4340 = sst [smem:[#allocation26_spill]] %s4312_s16 }
   0xa   :  { %4341 = sst [smem:[#allocation27_spill]] %s4313_s17 }
   0xb   :  { %4342 = sst [smem:[#allocation28_spill]] %s4314_s18 }
   0xc   :  { %4343 = sst [smem:[#allocation29_spill]] %s4315_s19 }
   0xd   :  { %24 = vsyncpa [#allocation4], 0 }
   0xe   :  { %26 = vsyncpa [#allocation4 + $0x1], 0  ;;  %s3716_s0 = smov 0   ;;  %s3718_s30 = smov 0  }
   0xf   :  { %s3720_s20 = smov 0   ;;  %s3722_s21 = smov 0  }
  0x10   :  { %s3724_s1 = smov 0   ;;  %s3726_s22 = smov 0  }
  0x11   :  { %s3728_s2 = smov 0   ;;  %s3730_s23 = smov 0  }
  0x12 LB: > { %4344 = sst [smem:[#allocation6_spill]] %s3579_s0  ;;  %s2887_s24 = sadd.s32 4294967295, %s3607_s23   ;;  %s3607_s23 = sphi %s3730_s23, %s32_s23   ;;  %s3603_s2 = sphi %s3728_s2, %s4391_s2   ;;  %s3599_s22 = sphi %s3726_s22, %s4390_s22   ;;  %s3595_s1 = sphi %s3724_s1, %s4389_s1   ;;  %s3591_s21 = sphi %s3722_s21, %s4388_s21   ;;  %s3587_s20 = sphi %s3720_s20, %s4387_s20   ;;  %s3583_s30 = sphi %s3718_s30, %s4393_s30   ;;  %s3579_s0 = sphi %s3716_s0, %s4392_s0  }
  0x13   : > { %4345 = sst [smem:[#allocation7_spill]] %s3587_s20  ;;  %s2888_s25 = sadd.s32 4294967294, %s3607_s23  }
  0x14   : > { %4346 = sst [smem:[#allocation8_spill]] %s3591_s21  ;;  %s41_s3 = sadd.s32 1, %s3599_s22 }
  0x15   : > { %4347 = sst [smem:[#allocation9_spill]] %s3595_s1  ;;  %p42_p0 = scmp.ge.s32.totalorder %s41_s3, 2 }
  0x16   : > { %4348 = sst [smem:[#allocation10_spill]] %s3599_s22  ;;  %s44_s26 = sadd.s32 1, %s3603_s2 }
  0x17   : > { %4349 = sst [smem:[#allocation11_spill]] %s3603_s2  ;;  %p525_p1 = scmp.ne.s32.totalorder %s3587_s20, %s3583_s30 }
  0x18   : > { %4350 = sst [smem:[#allocation12_spill]] %s3607_s23  ;;  %p526_p2 = scmp.eq.s32.totalorder %s2887_s24, 3 }
  0x19   : > { %s4395_s3 = smov (%p42_p0, %s41_s3), 0  ;;  %s4397_s26 = smov (!%p42_p0, %s44_s26), %s3603_s2 }
  0x1a   : > { %4351 = sst [smem:[#allocation13_spill]] %s4395_s3  ;;  %p3765_p3 = por %p526_p2, %p525_p1 }
  0x1b   : > { %p531_p4 = scmp.ne.s32.totalorder %s3583_s30, %s3579_s0  ;;  %p46_p5 = scmp.ge.s32.totalorder %s4397_s26, 2 }
  0x1c   : > { %s4352_s27 = scalar_select %p3765_p3, 1, 0 }
  0x1d   : > { %p532_p6 = scmp.eq.s32.totalorder %s2888_s25, 3  ;;  %p2891_p7 = scmp.ge.s32.totalorder %s3607_s23, 1 }
  0x1e   : > { %4353 = sst [smem:[#allocation14_spill]] %s4352_s27  ;;  %p658_p8 = scmp.lt.s32.totalorder %s3607_s23, 5 }
  0x1f   : > { %s4399_s26 = smov (%p46_p5, %s4397_s26), 0  ;;  %p3775_p9 = por %p532_p6, %p531_p4 }
  0x20   : > { %4354 = sst [smem:[#allocation15_spill]] %s4399_s26  ;;  %p659_p10 = pnand %p2891_p7, %p658_p8 }
  0x21   : > { %s4355_s28 = scalar_select %p3775_p9, 1, 0 }
  0x22   : > { %s512_s29 = ssub.s32 %s3603_s2, %s4399_s26  ;;  %s515_s24 = sadd.s32 1, %s3587_s20 }
  0x23   : > { %4356 = sst [smem:[#allocation16_spill]] %s4355_s28  ;;  %p513_p11 = scmp.eq.s32.totalorder %s512_s29, 0 }
  0x24   : > { %662 = sbr.rel (%p659_p10) target bundleno = 4419 (0x1143), region = 96  ;;  %p759_p12 = scmp.lt.s32.totalorder (!%p659_p10), %s3595_s1, 1 }
  0x25   : > { %s3783_s3 = scalar_select %p513_p11, %s3587_s20, %s515_s24  }
  0x26   : > { %p764_p13 = scmp.lt.s32.totalorder (!%p659_p10), %s3591_s21, 1  ;;  %s4359_s27 = sld [smem:[#allocation18_spill]] (!%p659_p10) }
  0x27   : > { %4357 = sst [smem:[#allocation17_spill]] %s3783_s3  ;;  %s4360_s5 = sld [smem:[#allocation22_spill]] (!%p659_p10) }
  0x28   : > { %s4361_s7 = sld [smem:[#allocation24_spill]] (!%p659_p10)  ;;  %s4362_s6 = sld [smem:[#allocation23_spill]] (!%p659_p10) }
  0x2b   : > { %s760_s22 = scalar_select %p759_p12, %s3595_s1, 1 }
  0x2c   : > { %s3790_s0 = scalar_select %p764_p13, %s3591_s21, 1 }
  0x2d   : > { %s3248_s29 = smul.u32 24, %s760_s22 }
  0x2e   : > { %s3249_s18 = smul.u32 192, %s3790_s0  ;;  %s3005_s15 = sshll.u32 %s3790_s0, 6 }
  0x2f   : > { %s3803_s1 = scalar_lea.vmem %s4359_s27, %s3248_s29  ;;  %s3250_s16 = smul.u32 3, %s3790_s0 }
  0x30   : > { %s3811_s21 = scalar_lea.vmem %s4360_s5, %s3249_s18  ;;  %s3816_s20 = scalar_lea.vmem %s4361_s7, %s3005_s15 }
  0x31   : > { %s3821_s19 = scalar_lea.vmem %s4362_s6, %s3250_s16  ;;  %s3006_s2 = sshll.u32 %s3790_s0, 7 }
  0x32   : > { %s2898_s15 = sshll.u32 %s3790_s0, 1  ;;  %s3840_s3 = scalar_lea.vmem %s4307_s11, %s3006_s2 }
  0x33   : > { %s3845_s23 = scalar_lea.vmem %s4308_s12, %s2898_s15  ;;  %s3850_s28 = scalar_lea.vmem %s4309_s13, %s3006_s2 }
  0x34   : > { %s809_s22 = scalar_lea.vmem %s4310_s14, %s3790_s0  ;;  %s4363_s5 = sand.u32 1, %s3583_s30  }
  0x35   : > { %s3858_s17 = scalar_lea.vmem [#allocation3], %s4363_s5  ;;  %s4364_s7 = sld [smem:[#allocation8_spill]] }
  0x3b   : > { %p2901_p0 = scmp.ne.s32.totalorder %s4364_s7, 0 }
  0x3c   : > { %s4365_s16 = sld [smem:[#allocation20_spill]] (!%p2901_p0)  ;;  %v815_v2 = vld [vmem:[%s3803_s1] sm:$0xff] (!%p2901_p0)  ;;  %v816_v3 = vld [vmem:[%s3803_s1 + $0x8] sm:$0xff] (!%p2901_p0)  ;;  %vm847_vm0 = vcmask (!%p2901_p0), 392192   ;;  %v817_v6 = vld [vmem:[%s3803_s1 + $0x10] sm:$0xff] (!%p2901_p0)  ;;  %s4366_s27 = sld [smem:[#allocation19_spill]] (!%p2901_p0) }
  0x3d   : > { %814 = sbr.rel (%p2901_p0) target bundleno = 297 (0x129), region = 100  ;;  %v818_v5 = vpack.c.bf16 (!%p2901_p0), %v816_v3, %v815_v2  ;;  %v819_v7 = vpack.c.bf16 (!%p2901_p0), %v817_v6, %v817_v6 }
  0x3f   : > { %3108 = vmatprep.mubr.msk.bf16.mxu0 (!%p2901_p0), %vm847_vm0, %v818_v5 }
  0x42   : > { %v3328_v0 = vld [vmem:[%s4365_s16] sm:$0xff] (!%p2901_p0)   ;;  %v3329_v1 = vld [vmem:[%s4365_s16 + $0x8] sm:$0xff] (!%p2901_p0)   ;;  %v3330_v4 = vld [vmem:[%s4365_s16 + $0x10] sm:$0xff] (!%p2901_p0)  }
  0x43   : > { %3102 = vmatprep.subr.bf16.mxu0 (!%p2901_p0), %v3328_v0  ;;  %v828_v8 = vld [vmem:[%s4366_s27 + $0x10] sm:$0xff] (!%p2901_p0)  ;;  %v826_v9 = vld [vmem:[%s4366_s27] sm:$0xff] (!%p2901_p0)  ;;  %v827_v13 = vld [vmem:[%s4366_s27 + $0x8] sm:$0xff] (!%p2901_p0) }
  0x44   : > { %3103 = vmatpush3.bf16.msra.mxu0 %v3328_v0 }
  0x45   : > { %3104 = vmatprep.subr.bf16.mxu0 %v3329_v1 }
  0x48   : > { %3105 = vmatpush3.bf16.msra.mxu0 %v3329_v1 }
  0x49   : > { %3106 = vmatprep.subr.bf16.mxu0 %v3330_v4 }
  0x4c   : > { %3107 = vmatpush3.bf16.msra.mxu0 %v3330_v4 }
  0x4f   : > { %3109 = vmatmul.mubr.msk.bf16.vlgmr.msra.gmra.mrb[0].mxu0 %vm847_vm0, %v819_v7 }
 0x122   : > { %v3110_v10 = vpop.f32.mrb[0].mxu0 }
 0x123   : > { %v897_v11 = vadd.f32 %v3110_v10, %v828_v8  ;;  %v888_v12 = vpop.f32.mrb[1].mxu0 }
 0x124   : > { %v889_v14 = vadd.f32 %v888_v12, %v826_v9  ;;  %v3111_v15 = vpop.f32.mrb[2].mxu0 }
 0x125   : > { %904 = vst [vmem:[#allocation2 + $0x10] sm:$0xff] %v897_v11  ;;  %v891_v16 = vpop.f32.mrb[3].mxu0 }
 0x126   : > { %902 = vst [vmem:[#allocation2] sm:$0xff] %v889_v14  ;;  %v892_v17 = vadd.f32 %v891_v16, %v827_v13 }
 0x128   : > { %903 = vst [vmem:[#allocation2 + $0x8] sm:$0xff] %v892_v17 }
 0x129 PF: > { %v3346_v21 = vld [vmem:[%s3811_s21 + $0x4] ss:$12 sps:$4 sm:$0xff]   ;;  %v3348_v22 = vld [vmem:[%s3811_s21] ss:$12 sps:$4 sm:$0xff]   ;;  %v3349_v23 = vld [vmem:[%s3811_s21 + $0x8] ss:$12 sps:$4 sm:$0xff]   ;;  %s4369_s6 = scalar_lea.vmem %s4300_s4, %s3790_s0  ;;  %s4370_s7 = scalar_lea.vmem %s4304_s8, %s3790_s0 }
 0x12a   : > { %v3350_v24 = vld [vmem:[%s3811_s21 + $0x1c] ss:$12 sps:$4 sm:$0xff]   ;;  %1141 = vmatprep.subr.bf16.mxu0 %v3346_v21  ;;  %3112 = vmatprep.subr.bf16.mxu1 %v3349_v23  ;;  %v3352_v37 = vld [vmem:[%s3811_s21 + $0x18] ss:$12 sps:$4 sm:$0xff]   ;;  %v3353_v38 = vld [vmem:[%s3811_s21 + $0x20] ss:$12 sps:$4 sm:$0xff]  }
 0x12b   : > { %1142 = vmatpush1.bf16.msra.mxu0 %v3348_v22  ;;  %3113 = vmatpush3.bf16.msra.mxu1 %v3349_v23  ;;  %v3354_v39 = vld [vmem:[%s3811_s21 + $0x34] ss:$12 sps:$4 sm:$0xff]   ;;  %v3356_v40 = vld [vmem:[%s3811_s21 + $0x30] ss:$12 sps:$4 sm:$0xff]   ;;  %v3357_v41 = vld [vmem:[%s3811_s21 + $0x38] ss:$12 sps:$4 sm:$0xff]  }
 0x12c   : > { %v907_v19 = vld [vmem:[#allocation2 + $0x10] sm:$0xff]  ;;  %1143 = vmatprep.subr.bf16.mxu0 %v3350_v24  ;;  %3114 = vmatprep.subr.bf16.mxu1 %v3353_v38  ;;  %v3358_v42 = vld [vmem:[%s3811_s21 + $0x4c] ss:$12 sps:$4 sm:$0xff]   ;;  %v3366_v48 = vld [vmem:[%s3811_s21 + $0x7c] ss:$12 sps:$4 sm:$0xff]   ;;  %v3609_v53 = vmov 0  }
 0x12d   : > { %v905_v18 = vld [vmem:[#allocation2] sm:$0xff]  ;;  %914 = vadd.xlane.f32.xlu1 %v907_v19  ;;  %v3360_v43 = vld [vmem:[%s3811_s21 + $0x48] ss:$12 sps:$4 sm:$0xff]   ;;  %v3361_v44 = vld [vmem:[%s3811_s21 + $0x50] ss:$12 sps:$4 sm:$0xff]   ;;  %1173 = vmatprep.mubr.bf16.mxu0 %v3609_v53  ;;  %s4367_s29 = sld [smem:[#allocation21_spill]] }
 0x12e   : > { %910 = vadd.xlane.f32.xlu0 %v905_v18  ;;  %v3362_v45 = vld [vmem:[%s3811_s21 + $0x64] ss:$12 sps:$4 sm:$0xff]   ;;  %v3364_v46 = vld [vmem:[%s3811_s21 + $0x60] ss:$12 sps:$4 sm:$0xff]   ;;  %v3365_v47 = vld [vmem:[%s3811_s21 + $0x68] ss:$12 sps:$4 sm:$0xff]  }
 0x12f   : > { %v906_v20 = vld [vmem:[#allocation2 + $0x8] sm:$0xff]  ;;  %1144 = vmatpush1.bf16.msra.mxu0 %v3352_v37  ;;  %3115 = vmatpush3.bf16.msra.mxu1 %v3353_v38  ;;  %v3368_v50 = vld [vmem:[%s3811_s21 + $0x78] ss:$12 sps:$4 sm:$0xff]   ;;  %v3370_v51 = vld [vmem:[%s3811_s21 + $0x94] ss:$12 sps:$4 sm:$0xff]   ;;  %vm1252_vm1 = vcmask 261120  }
 0x130   : > { %1145 = vmatprep.subr.bf16.mxu0 %v3354_v39  ;;  %3116 = vmatprep.subr.bf16.mxu1 %v3357_v41  ;;  %v3369_v49 = vld [vmem:[%s3811_s21 + $0x80] ss:$12 sps:$4 sm:$0xff]   ;;  %v3373_v52 = vld [vmem:[%s3811_s21 + $0x98] ss:$12 sps:$4 sm:$0xff]   ;;  %v3372_v54 = vld [vmem:[%s3811_s21 + $0x90] ss:$12 sps:$4 sm:$0xff]  }
 0x131   : > { %v3374_v55 = vld [vmem:[%s3811_s21 + $0xac] ss:$12 sps:$4 sm:$0xff]   ;;  %v3377_v56 = vld [vmem:[%s3811_s21 + $0xb0] ss:$12 sps:$4 sm:$0xff]   ;;  %v3376_v57 = vld [vmem:[%s3811_s21 + $0xa8] ss:$12 sps:$4 sm:$0xff]   ;;  %s4371_s21 = scalar_lea.vmem %s4305_s9, %s3790_s0 }
 0x132   : > { %912 = vadd.xlane.f32.xlu0 %v906_v20  ;;  %v2908_v11 = vld [vmem:[%s4369_s6] ss:$0 sm:$0xff]  ;;  %vm1358_vm2 = vcmask 1043456   ;;  %vm1316_vm4 = vcmask 195584   ;;  %s3611_s24 = smov 64   ;;  %s3612_s25 = smov 32  }
 0x133   : > { %1146 = vmatpush1.bf16.msra.mxu0 %v3356_v40  ;;  %3117 = vmatpush3.bf16.msra.mxu1 %v3357_v41  ;;  %s4368_s2 = scalar_lea.vmem %s4367_s29, %s3790_s0  ;;  %v996_v22 = vld [vmem:[%s3821_s19] sm:$0x7]  ;;  %s3610_s19 = smov 96   ;;  %vm1959_vm5 = vcmask 523264   ;;  %vm1963_vm6 = vcmask 785408  }
 0x134   : > { %1147 = vmatprep.subr.bf16.mxu0 %v3358_v42  ;;  %3118 = vmatprep.subr.bf16.mxu1 %v3361_v44  ;;  %v2907_v5 = vld [vmem:[%s4368_s2] ss:$0 sm:$0xff]  ;;  %s4372_s2 = scalar_lea.vmem %s4306_s10, %s3790_s0  ;;  %s4373_s0 = sld [smem:[#allocation8_spill]] }
 0x137   : > { %1148 = vmatpush1.bf16.msra.mxu0 %v3360_v43  ;;  %3119 = vmatpush3.bf16.msra.mxu1 %v3361_v44 }
 0x138   : > { %1149 = vmatprep.subr.bf16.mxu0 %v3362_v45  ;;  %3120 = vmatprep.subr.bf16.mxu1 %v3365_v47 }
 0x13a   : > { %p2993_p1 = scmp.ne.s32.totalorder %s4373_s0, 1 }
 0x13b   : > { %1150 = vmatpush1.bf16.msra.mxu0 %v3364_v46  ;;  %3121 = vmatpush3.bf16.msra.mxu1 %v3365_v47  ;;  %vm2558_vm7 = vcmask (!%p2993_p1), 1040384   ;;  %s4374_s15 = sld [smem:[#allocation27_spill]] (!%p2993_p1)  ;;  %vm3614_vm8 = vmmov (!%p2993_p1), 0  }
 0x13c   : > { %1151 = vmatprep.subr.bf16.mxu0 %v3366_v48  ;;  %3122 = vmatprep.subr.bf16.mxu1 %v3369_v49 }
 0x13f   : > { %1152 = vmatpush1.bf16.msra.mxu0 %v3368_v50  ;;  %3123 = vmatpush3.bf16.msra.mxu1 %v3369_v49 }
 0x140   : > { %1153 = vmatprep.subr.bf16.mxu0 %v3370_v51  ;;  %3124 = vmatprep.subr.bf16.mxu1 %v3373_v52 }
 0x143   : > { %1154 = vmatpush1.bf16.msra.mxu0 %v3372_v54  ;;  %3125 = vmatpush3.bf16.msra.mxu1 %v3373_v52 }
 0x144   : > { %1155 = vmatprep.subr.bf16.mxu0 %v3374_v55  ;;  %3126 = vmatprep.subr.bf16.mxu1 %v3377_v56 }
 0x147   : > { %1156 = vmatpush1.bf16.msra.mxu0 %v3376_v57  ;;  %3127 = vmatpush3.bf16.msra.mxu1 %v3377_v56 }
 0x1ba   : > { %v915_v26 = vpop.xlane.xlu1 %914 }
 0x1bb   : > { %v911_v25 = vpop.xlane.xlu0 %910  ;;  %v919_v28 = vmul.f32 0.0078125, %v915_v26 }
 0x1bc   : > { %v917_v27 = vmul.f32 0.0078125, %v911_v25 }
 0x1bd   : > { %v3888_v30 = vsub.f32 %v907_v19, %v919_v28  ;;  %v998_v19 = vlaneseq }
 0x1be   : > { %v3886_v29 = vsub.f32 %v905_v18, %v917_v27 }
 0x1bf   : > { %v913_v31 = vpop.xlane.xlu0 %912  ;;  %v925_v35 = vmul.f32 %v3888_v30, %v3888_v30 }
 0x1c0   : > { %v918_v32 = vmul.f32 0.0078125, %v913_v31  ;;  %v923_v33 = vmul.f32 %v3886_v29, %v3886_v29 }
 0x1c2   : > { %v3892_v34 = vsub.f32 %v906_v20, %v918_v32  ;;  %926 = vadd.xlane.f32.xlu1 %v923_v33  ;;  %v3933_v20 = vshrl.u32 %v998_v19, 7 }
 0x1c4   : > { %v924_v36 = vmul.f32 %v3892_v34, %v3892_v34  ;;  %v1000_v21 = vsub.s32 0, %v3933_v20  ;;  %v1004_v23 = vsub.s32 1, %v3933_v20  ;;  %v1008_v25 = vsub.s32 2, %v3933_v20 }
 0x1c6   : > { %930 = vadd.xlane.f32.xlu1 %v925_v35  ;;  %928 = vadd.xlane.f32.xlu0 %v924_v36  ;;  %v1001_v24 = vrot.slane %v996_v22, %v1000_v21  ;;  %v1005_v27 = vrot.slane %v996_v22, %v1004_v23 }
 0x24f   : > { %v927_v58 = vpop.xlane.xlu1 %926 }
 0x250   : > { %v932_v59 = vmul.f32 0.0078125, %v927_v58 }
 0x252   : > { %v935_v60 = vadd.f32 1e-12, %v932_v59 }
 0x253   : > { %v931_v61 = vpop.xlane.xlu1 %930  ;;  %v929_v62 = vpop.xlane.xlu0 %928 }
 0x254   : > { %3426 = vrsqrt.f32 %v935_v60  ;;  %v934_v63 = vmul.f32 0.0078125, %v931_v61  ;;  %v933_v0 = vmul.f32 0.0078125, %v929_v62  ;;  %v3973_v62 = vand.u32 127, %v998_v19 }
 0x256   : > { %v937_v1 = vadd.f32 1e-12, %v934_v63  ;;  %v936_v2 = vadd.f32 1e-12, %v933_v0  ;;  %vm1251_vm3 = vcmp.lt.s32.totalorder %v3973_v62, 17 }
 0x258   : > { %3428 = vrsqrt.f32 %v937_v1 }
 0x259   : > { %3430 = vrsqrt.f32 %v936_v2 }
 0x25e   : > { %v3427_v3 = vpop.eup %3426 }
 0x25f   : > { %v941_v4 = vmul.f32 %v3427_v3, %v3886_v29 }
 0x261   : > { %v950_v10 = vmul.f32 %v2907_v5, %v941_v4 }
 0x262   : > { %v3429_v6 = vpop.eup %3428 }
 0x263   : > { %v3431_v7 = vpop.eup %3430  ;;  %v943_v8 = vmul.f32 %v3429_v6, %v3888_v30  ;;  %v959_v15 = vadd.f32 %v2908_v11, %v950_v10  ;;  %v1009_v30 = vrot.slane %v996_v22, %v1008_v25 }
 0x264   : > { %v942_v9 = vmul.f32 %v3431_v7, %v3892_v34 }
 0x265   : > { %v952_v12 = vmul.f32 %v2907_v5, %v943_v8 }
 0x266   : > { %v951_v13 = vmul.f32 %v2907_v5, %v942_v9 }
 0x267   : > { %v961_v14 = vadd.f32 %v2908_v11, %v952_v12 }
 0x268   : > { %v960_v16 = vadd.f32 %v2908_v11, %v951_v13 }
 0x269   : > { %v963_v17 = vpack.c.bf16 %v961_v14, %v961_v14 }
 0x26a   : > { %v962_v18 = vpack.c.bf16 %v960_v16, %v959_v15 }
 0x26c   : > { %1174 = vmatmul.mubr.bf16.vlgmr.msra.gmra.mrb[0].mxu0 %v962_v18  ;;  %3128 = vmatprep.mubr.bf16.mxu1 %v962_v18 }
 0x26d   : > { %3129 = vmatmul.mubr.bf16.vlgmr.msra.gmra.mrb[0].mxu1 %v963_v17  ;;  %1183 = vmatprep.mubr.bf16.mxu0 %v3609_v53 }
 0x274   : > { %1184 = vmatmul.mubr.bf16.gmra.mrb[4].mxu0 %v963_v17 }
 0x33f   : > { %v1175_v26 = vpop.f32.mrb[0].mxu0 }
 0x340   : > { %v1176_v28 = vadd.f32 %v1175_v26, %v1001_v24  ;;  %v1177_v29 = vpop.f32.mrb[1].mxu0  ;;  %v3130_v31 = vpop.f32.mrb[0].mxu1 }
 0x341   : > { %v1179_v32 = vpop.f32.mrb[2].mxu0  ;;  %v1226_v33 = vpop.f32.mrb[1].mxu1  ;;  %v1178_v37 = vadd.f32 %v1177_v29, %v1005_v27  ;;  %v1235_v44 = vadd.f32 %v3130_v31, %v1009_v30 }
 0x342   : > { %v1180_v34 = vadd.f32 %v1179_v32, %v1001_v24  ;;  %v1181_v35 = vpop.f32.mrb[3].mxu0  ;;  %v3131_v36 = vpop.f32.mrb[2].mxu1  ;;  %v1240_v40 = vmul.f32 0.17677669, %v1176_v28  ;;  %v1227_v42 = vadd.f32 %v1226_v33, %v1009_v30 }
 0x343   : > { %v1182_v38 = vadd.f32 %v1181_v35, %v1005_v27  ;;  %v1229_v39 = vpop.f32.mrb[3].mxu1  ;;  %v3955_v51 = vpack.c.bf16 %v1235_v44, %v1235_v44 }
 0x344   : > { %v1241_v41 = vmul.f32 0.17677669, %v1180_v34  ;;  %v1230_v43 = vadd.f32 %v1229_v39, %v1009_v30 }
 0x345   : > { %v3943_v45 = vpack.c.bf16 %v1182_v38, %v1178_v37  ;;  %v1360_v58 = vsel %vm1358_vm2, %v3955_v51, 0 }
 0x346   : > { %v3945_v46 = vpack.c.bf16 %v1241_v41, %v1240_v40  ;;  %v3947_v47 = vpack.c.bf16 %v1230_v43, %v1227_v42 }
 0x347   : > { %v1185_v48 = vpop.f32.mrb[4].mxu0  ;;  %3236 = vmatprep.subr.msk.bf16.mxu0 %vm1252_vm1, %v3943_v45  ;;  %v1260_v49 = vsel %vm1252_vm1, %v3943_v45, 0 }
 0x348   : > { %v1187_v50 = vpop.f32.mrb[5].mxu0  ;;  %3133 = vmatpush3.bf16.xpose.msra.mxu0 %v1260_v49  ;;  %3136 = vmatprep.mubr.msk.bf16.mxu0 %vm1252_vm1, %v3945_v46  ;;  %v1186_v57 = vadd.f32 %v1185_v48, %v1001_v24 }
 0x349   : > { %v1188_v52 = vadd.f32 %v1187_v50, %v1005_v27  ;;  %3140 = vmatprep.subr.bf16.mxu1 %v3947_v47  ;;  %v1189_v54 = vpop.f32.mrb[6].mxu0 }
 0x34a   : > { %3141 = vmatpush3.bf16.msra.mxu1 %v3947_v47  ;;  %v1190_v55 = vpop.f32.mrb[7].mxu0  ;;  %v1242_v60 = vmul.f32 0.17677669, %v1186_v57 }
 0x34b   : > { %v3959_v56 = vpack.c.bf16 %v1188_v52, %v1188_v52  ;;  %3238 = vmatprep.subr.msk.bf16.mxu1 %vm1358_vm2, %v3955_v51 }
 0x34c   : > { %v3969_v61 = vpack.c.bf16 %v1242_v60, %v1242_v60 }
 0x34d   : > { %3237 = vmatprep.subr.msk.bf16.mxu0 %vm1252_vm1, %v3959_v56  ;;  %v1263_v59 = vsel %vm1252_vm1, %v3959_v56, 0 }
 0x34e   : > { %3143 = vmatpush3.bf16.msra.mxu1 %v1360_v58 }
 0x350   : > { %3135 = vmatpush3.bf16.xpose.msra.mxu0 %v1263_v59 }
 0x357   : > { %3137 = vmatmul.mubr.msk.bf16.vlgmr.msra.gmra.mrb[8].mxu0 %vm1252_vm1, %v3969_v61 }
 0x42a   : > { %v3138_v63 = vpop.f32.mrb[8].mxu0 }
 0x42b   : > { %v1299_v0 = vpop.f32.mrb[9].mxu0  ;;  %v1315_v5 = vsel %vm1251_vm3, %v3138_v63, -1e+30 }
 0x42c   : > { %v1313_v1 = vsel %vm1251_vm3, %v1299_v0, -1e+30  ;;  %v3139_v2 = vpop.f32.mrb[10].mxu0  ;;  %v1323_v8 = vsel %vm1316_vm4, %v1315_v5, -inf }
 0x42d   : > { %v1302_v3 = vpop.f32.mrb[11].mxu0  ;;  %v1317_v4 = vsel %vm1316_vm4, %v1313_v1, -inf }
 0x42e   : > { %v1314_v6 = vsel %vm1251_vm3, %v1302_v3, -1e+30  ;;  %1318 = vmax.xlane.f32.xlu0 %v1317_v4 }
 0x42f   : > { %v1320_v7 = vsel %vm1316_vm4, %v1314_v6, -inf }
 0x430   : > { %1321 = vmax.xlane.f32.xlu1 %v1320_v7 }
 0x432   : > { %1324 = vmax.xlane.f32.xlu0 %v1323_v8 }
 0x4bb   : > { %v1319_v9 = vpop.xlane.xlu0 %1318 }
 0x4bc   : > { %v1326_v10 = vsub.f32 %v1313_v1, %v1319_v9 }
 0x4bd   : > { %v1322_v11 = vpop.xlane.xlu1 %1321 }
 0x4be   : > { %v1329_v12 = vmul.f32 1.442695, %v1326_v10  ;;  %v1327_v13 = vsub.f32 %v1314_v6, %v1322_v11 }
 0x4bf   : > { %v1325_v14 = vpop.xlane.xlu0 %1324 }
 0x4c0   : > { %3432 = vpow2.f32 %v1329_v12  ;;  %v1331_v15 = vmul.f32 1.442695, %v1327_v13  ;;  %v1328_v16 = vsub.f32 %v1315_v5, %v1325_v14 }
 0x4c2   : > { %3434 = vpow2.f32 %v1331_v15  ;;  %v1333_v17 = vmul.f32 1.442695, %v1328_v16 }
 0x4c4   : > { %3436 = vpow2.f32 %v1333_v17 }
 0x4ca   : > { %v3433_v18 = vpop.eup %3432 }
 0x4cb   : > { %v1335_v19 = vsel %vm1316_vm4, %v3433_v18, 0.0 }
 0x4cc   : > { %v3435_v22 = vpop.eup %3434  ;;  %1336 = vadd.xlane.f32.xlu1 %v1335_v19 }
 0x4cd   : > { %v1338_v24 = vsel %vm1316_vm4, %v3435_v22, 0.0 }
 0x4ce   : > { %v3437_v25 = vpop.eup %3436  ;;  %1339 = vadd.xlane.f32.xlu0 %v1338_v24 }
 0x4cf   : > { %v1341_v26 = vsel %vm1316_vm4, %v3437_v25, 0.0 }
 0x4d0   : > { %1342 = vadd.xlane.f32.xlu1 %v1341_v26 }
 0x4e1   : > { %1420 = vrot.lane.b32.xlu1 %v3959_v56, %s3610_s19 }
 0x4e4   : > { %1418 = vrot.lane.b32.xlu0 %v3943_v45, %s3610_s19 }
 0x4e5   : > { %1412 = vrot.lane.b32.xlu1 %v3945_v46, %s3610_s19 }
 0x4e8   : > { %1414 = vrot.lane.b32.xlu0 %v3969_v61, %s3610_s19 }
 0x4e9   : > { %1588 = vrot.lane.b32.xlu1 %v3943_v45, %s3611_s24 }
 0x4ec   : > { %1584 = vrot.lane.b32.xlu0 %v3945_v46, %s3611_s24 }
 0x4ed   : > { %1590 = vrot.lane.b32.xlu1 %v3959_v56, %s3611_s24 }
 0x4f1   : > { %1586 = vrot.lane.b32.xlu1 %v3969_v61, %s3611_s24 }
 0x559   : > { %v1337_v27 = vpop.xlane.xlu1 %1336 }
 0x55a   : > { %3438 = vrcp.f32 %v1337_v27 }
 0x55b   : > { %v1340_v28 = vpop.xlane.xlu0 %1339 }
 0x55c   : > { %3440 = vrcp.f32 %v1340_v28 }
 0x55d   : > { %v1343_v29 = vpop.xlane.xlu1 %1342 }
 0x55e   : > { %3442 = vrcp.f32 %v1343_v29 }
 0x55f   : > { %v1419_v30 = vpop.permute.xlu0 %1418 }
 0x560   : > { %3239 = vmatprep.subr.msk.bf16.mxu1 %vm1252_vm1, %v1419_v30  ;;  %v1429_v40 = vsel %vm1252_vm1, %v1419_v30, 0 }
 0x561   : > { %v1421_v33 = vpop.permute.xlu1 %1420 }
 0x562   : > { %v1432_v42 = vsel %vm1252_vm1, %v1421_v33, 0 }
 0x563   : > { %v1415_v44 = vpop.permute.xlu0 %1414 }
 0x564   : > { %v3439_v31 = vpop.eup %3438 }
 0x565   : > { %v1347_v34 = vmul.f32 %v3439_v31, %v3433_v18  ;;  %v1413_v41 = vpop.permute.xlu1 %1412 }
 0x566   : > { %v3441_v32 = vpop.eup %3440 }
 0x567   : > { %v1348_v35 = vmul.f32 %v3441_v32, %v3435_v22  ;;  %v1585_v48 = vpop.permute.xlu0 %1584 }
 0x568   : > { %v3443_v36 = vpop.eup %3442 }
 0x569   : > { %v1349_v37 = vmul.f32 %v3443_v36, %v3437_v25  ;;  %v1350_v38 = vpack.c.bf16 %v1348_v35, %v1347_v34  ;;  %v1589_v43 = vpop.permute.xlu1 %1588 }
 0x56a   : > { %v1599_v49 = vsel %vm1252_vm1, %v1589_v43, 0 }
 0x56b   : > { %3144 = vmatprep.mubr.msk.bf16.mxu1 %vm1316_vm4, %v1350_v38  ;;  %v1351_v39 = vpack.c.bf16 %v1349_v37, %v1349_v37 }
 0x56d   : > { %3145 = vmatmul.mubr.msk.bf16.vlgmr.msra.gmra.mrb[4].mxu1 %vm1316_vm4, %v1351_v39  ;;  %v1591_v50 = vpop.permute.xlu1 %1590 }
 0x56e   : > { %3149 = vmatpush3.bf16.xpose.msra.mxu1 %v1429_v40  ;;  %3152 = vmatprep.mubr.msk.bf16.mxu1 %vm1252_vm1, %v1413_v41  ;;  %v1602_v52 = vsel %vm1252_vm1, %v1591_v50, 0 }
 0x56f   : > { %3240 = vmatprep.subr.msk.bf16.mxu1 %vm1252_vm1, %v1421_v33 }
 0x571   : > { %v1587_v54 = vpop.permute.xlu1 %1586 }
 0x576   : > { %3151 = vmatpush3.bf16.xpose.msra.mxu1 %v1432_v42 }
 0x577   : > { %3242 = vmatprep.subr.msk.bf16.mxu1 %vm1252_vm1, %v1589_v43 }
 0x57d   : > { %3153 = vmatmul.mubr.msk.bf16.vlgmr.msra.gmra.mrb[8].mxu1 %vm1252_vm1, %v1415_v44 }
 0x57e   : > { %3165 = vmatpush3.bf16.xpose.msra.mxu1 %v1599_v49  ;;  %3168 = vmatprep.mubr.msk.bf16.mxu1 %vm1252_vm1, %v1585_v48 }
 0x57f   : > { %3243 = vmatprep.subr.msk.bf16.mxu1 %vm1252_vm1, %v1591_v50 }
 0x586   : > { %3167 = vmatpush3.bf16.xpose.msra.mxu1 %v1602_v52 }
 0x58d   : > { %3169 = vmatmul.mubr.msk.bf16.vlgmr.msra.gmra.mrb[12].mxu1 %vm1252_vm1, %v1587_v54 }
 0x640   : > { %v4018_v55 = vpop.f32.mrb[4].mxu1 }
 0x641   : > { %v4020_v57 = vpop.f32.mrb[5].mxu1 }
 0x642   : > { %v3147_v58 = vpop.f32.mrb[6].mxu1 }
 0x643   : > { %v4022_v59 = vpop.f32.mrb[7].mxu1 }
 0x650   : > { %v3154_v60 = vpop.f32.mrb[8].mxu1 }
 0x651   : > { %v1468_v63 = vpop.f32.mrb[9].mxu1 }
 0x652   : > { %v3155_v0 = vpop.f32.mrb[10].mxu1  ;;  %v1482_v30 = vsel %vm1251_vm3, %v1468_v63, -1e+30 }
 0x653   : > { %v1471_v1 = vpop.f32.mrb[11].mxu1  ;;  %v1485_v31 = vsel %vm1316_vm4, %v1482_v30, -inf }
 0x660   : > { %v3170_v2 = vpop.f32.mrb[12].mxu1 }
 0x661   : > { %v1638_v3 = vpop.f32.mrb[13].mxu1  ;;  %v1654_v8 = vsel %vm1251_vm3, %v3170_v2, -1e+30 }
 0x662   : > { %v1652_v4 = vsel %vm1251_vm3, %v1638_v3, -1e+30  ;;  %v3171_v5 = vpop.f32.mrb[14].mxu1  ;;  %v1661_v11 = vsel %vm1316_vm4, %v1654_v8, -inf }
 0x663   : > { %v1641_v6 = vpop.f32.mrb[15].mxu1  ;;  %v1655_v7 = vsel %vm1316_vm4, %v1652_v4, -inf }
 0x664   : > { %v1653_v9 = vsel %vm1251_vm3, %v1641_v6, -1e+30  ;;  %1656 = vmax.xlane.f32.xlu0 %v1655_v7 }
 0x665   : > { %v1658_v10 = vsel %vm1316_vm4, %v1653_v9, -inf }
 0x666   : > { %1659 = vmax.xlane.f32.xlu1 %v1658_v10 }
 0x668   : > { %1662 = vmax.xlane.f32.xlu0 %v1661_v11 }
 0x6f1   : > { %v1657_v12 = vpop.xlane.xlu0 %1656 }
 0x6f2   : > { %v1664_v13 = vsub.f32 %v1652_v4, %v1657_v12 }
 0x6f3   : > { %v1660_v14 = vpop.xlane.xlu1 %1659 }
 0x6f4   : > { %v1667_v15 = vmul.f32 1.442695, %v1664_v13  ;;  %v1665_v16 = vsub.f32 %v1653_v9, %v1660_v14 }
 0x6f5   : > { %v1663_v17 = vpop.xlane.xlu0 %1662 }
 0x6f6   : > { %3444 = vpow2.f32 %v1667_v15  ;;  %v1669_v18 = vmul.f32 1.442695, %v1665_v16  ;;  %v1666_v19 = vsub.f32 %v1654_v8, %v1663_v17 }
 0x6f8   : > { %3446 = vpow2.f32 %v1669_v18  ;;  %v1671_v22 = vmul.f32 1.442695, %v1666_v19 }
 0x6fa   : > { %3448 = vpow2.f32 %v1671_v22 }
 0x700   : > { %v3445_v24 = vpop.eup %3444 }
 0x701   : > { %v1673_v25 = vsel %vm1316_vm4, %v3445_v24, 0.0 }
 0x702   : > { %v3447_v26 = vpop.eup %3446  ;;  %1674 = vadd.xlane.f32.xlu0 %v1673_v25 }
 0x703   : > { %v1676_v29 = vsel %vm1316_vm4, %v3447_v26, 0.0 }
 0x704   : > { %v3449_v27 = vpop.eup %3448 }
 0x705   : > { %v1679_v28 = vsel %vm1316_vm4, %v3449_v27, 0.0 }
 0x706   : > { %1680 = vadd.xlane.f32.xlu1 %v1679_v28  ;;  %1677 = vadd.xlane.f32.xlu0 %v1676_v29 }
 0x717   : > { %1692 = vrot.lane.b32.xlu1 %v3955_v51, %s3611_s24 }
 0x71b   : > { %1756 = vrot.lane.b32.xlu1 %v3943_v45, %s3612_s25  ;;  %v1484_v45 = vsel %vm1251_vm3, %v3154_v60, -1e+30 }
 0x71c   : > { %1690 = vrot.lane.b32.xlu0 %v3947_v47, %s3611_s24  ;;  %v1491_v32 = vsel %vm1316_vm4, %v1484_v45, -inf }
 0x71f   : > { %1758 = vrot.lane.b32.xlu1 %v3959_v56, %s3612_s25  ;;  %v1483_v56 = vsel %vm1251_vm3, %v1471_v1, -1e+30 }
 0x720   : > { %1752 = vrot.lane.b32.xlu0 %v3945_v46, %s3612_s25  ;;  %v1488_v46 = vsel %vm1316_vm4, %v1483_v56, -inf }
 0x723   : > { %1754 = vrot.lane.b32.xlu1 %v3969_v61, %s3612_s25 }
 0x73f   : > { %1486 = vmax.xlane.f32.xlu0 %v1485_v31 }
 0x743   : > { %1492 = vmax.xlane.f32.xlu0 %v1491_v32 }
 0x747   : > { %1489 = vmax.xlane.f32.xlu1 %v1488_v46 }
 0x78f   : > { %v1675_v33 = vpop.xlane.xlu0 %1674 }
 0x790   : > { %3450 = vrcp.f32 %v1675_v33 }
 0x793   : > { %v1678_v61 = vpop.xlane.xlu0 %1677  ;;  %v1681_v34 = vpop.xlane.xlu1 %1680 }
 0x794   : > { %3452 = vrcp.f32 %v1678_v61 }
 0x795   : > { %3454 = vrcp.f32 %v1681_v34 }
 0x797   : > { %v1691_v35 = vpop.permute.xlu0 %1690  ;;  %v1693_v36 = vpop.permute.xlu1 %1692 }
 0x798   : > { %3172 = vmatprep.subr.bf16.mxu1 %v1691_v35  ;;  %v1702_v38 = vsel %vm1358_vm2, %v1693_v36, 0 }
 0x799   : > { %3173 = vmatpush3.bf16.msra.mxu1 %v1691_v35 }
 0x79a   : > { %3244 = vmatprep.subr.msk.bf16.mxu1 %vm1358_vm2, %v1693_v36  ;;  %v3451_v37 = vpop.eup %3450 }
 0x79b   : > { %v1757_v39 = vpop.permute.xlu1 %1756  ;;  %v1685_v42 = vmul.f32 %v3451_v37, %v3445_v24  ;;  %v1753_v50 = vpop.permute.xlu0 %1752 }
 0x79c   : > { %v1767_v52 = vsel %vm1252_vm1, %v1757_v39, 0 }
 0x79d   : > { %3175 = vmatpush3.bf16.msra.mxu1 %v1702_v38 }
 0x79e   : > { %v3453_v40 = vpop.eup %3452  ;;  %3245 = vmatprep.subr.msk.bf16.mxu1 %vm1252_vm1, %v1757_v39 }
 0x79f   : > { %v3455_v41 = vpop.eup %3454  ;;  %v1686_v43 = vmul.f32 %v3453_v40, %v3447_v26  ;;  %v1759_v54 = vpop.permute.xlu1 %1758 }
 0x7a0   : > { %v1687_v44 = vmul.f32 %v3455_v41, %v3449_v27  ;;  %v1770_v58 = vsel %vm1252_vm1, %v1759_v54, 0 }
 0x7a1   : > { %v1688_v48 = vpack.c.bf16 %v1686_v43, %v1685_v42 }
 0x7a2   : > { %v1689_v49 = vpack.c.bf16 %v1687_v44, %v1687_v44 }
 0x7a3   : > { %3176 = vmatprep.mubr.msk.bf16.mxu1 %vm1316_vm4, %v1688_v48  ;;  %v1755_v60 = vpop.permute.xlu1 %1754 }
 0x7a4   : > { %3177 = vmatmul.mubr.msk.bf16.vlgmr.msra.gmra.mrb[16].mxu1 %vm1316_vm4, %v1689_v49 }
 0x7a5   : > { %3184 = vmatprep.mubr.msk.bf16.mxu1 %vm1252_vm1, %v1753_v50 }
 0x7a6   : > { %3181 = vmatpush3.bf16.xpose.msra.mxu1 %v1767_v52 }
 0x7a7   : > { %3246 = vmatprep.subr.msk.bf16.mxu1 %vm1252_vm1, %v1759_v54 }
 0x7ae   : > { %3183 = vmatpush3.bf16.xpose.msra.mxu1 %v1770_v58 }
 0x7b5   : > { %3185 = vmatmul.mubr.msk.bf16.vlgmr.msra.gmra.mrb[20].mxu1 %vm1252_vm1, %v1755_v60 }
 0x7b6   : > { %2286 = vmatprep.mubr.bf16.mxu1 %v3609_v53 }
 0x7cc   : > { %v1487_v2 = vpop.xlane.xlu0 %1486 }
 0x7cd   : > { %v1494_v8 = vsub.f32 %v1482_v30, %v1487_v2 }
 0x7cf   : > { %v1497_v10 = vmul.f32 1.442695, %v1494_v8 }
 0x7d0   : > { %v1493_v9 = vpop.xlane.xlu0 %1492 }
 0x7d1   : > { %v1496_v11 = vsub.f32 %v1484_v45, %v1493_v9 }
 0x7d3   : > { %v1501_v12 = vmul.f32 1.442695, %v1496_v11 }
 0x7d4   : > { %v1490_v63 = vpop.xlane.xlu1 %1489 }
 0x7d5   : > { %v1495_v3 = vsub.f32 %v1483_v56, %v1490_v63 }
 0x7d7   : > { %v1499_v7 = vmul.f32 1.442695, %v1495_v3 }
 0x7d9   : > { %3456 = vpow2.f32 %v1499_v7 }
 0x7da   : > { %3458 = vpow2.f32 %v1497_v10 }
 0x7db   : > { %3460 = vpow2.f32 %v1501_v12 }
 0x7e3   : > { %v3457_v19 = vpop.eup %3456 }
 0x7e4   : > { %v1506_v26 = vsel %vm1316_vm4, %v3457_v19, 0.0  ;;  %v3459_v28 = vpop.eup %3458 }
 0x7e5   : > { %v1503_v29 = vsel %vm1316_vm4, %v3459_v28, 0.0  ;;  %v3461_v30 = vpop.eup %3460 }
 0x7e6   : > { %v1509_v31 = vsel %vm1316_vm4, %v3461_v30, 0.0 }
 0x877   : > { %v4068_v0 = vpop.f32.mrb[16].mxu1 }
 0x878   : > { %v4070_v1 = vpop.f32.mrb[17].mxu1 }
 0x879   : > { %v3179_v4 = vpop.f32.mrb[18].mxu1 }
 0x87a   : > { %v4072_v5 = vpop.f32.mrb[19].mxu1 }
 0x87b   : > { %v3336_v6 = vpack.i.bf16 %v4072_v5, %v4070_v1 }
 0x888   : > { %v3186_v13 = vpop.f32.mrb[20].mxu1 }
 0x889   : > { %v1822_v14 = vsel %vm1251_vm3, %v3186_v13, -1e+30  ;;  %v1806_v15 = vpop.f32.mrb[21].mxu1 }
 0x88a   : > { %v1820_v16 = vsel %vm1251_vm3, %v1806_v15, -1e+30  ;;  %v3187_v17 = vpop.f32.mrb[22].mxu1  ;;  %v1829_v18 = vsel %vm1316_vm4, %v1822_v14, -inf }
 0x88b   : > { %1830 = vmax.xlane.f32.xlu1 %v1829_v18  ;;  %v1809_v22 = vpop.f32.mrb[23].mxu1  ;;  %v1823_v24 = vsel %vm1316_vm4, %v1820_v16, -inf }
 0x88c   : > { %v1821_v25 = vsel %vm1251_vm3, %v1809_v22, -1e+30  ;;  %1824 = vmax.xlane.f32.xlu0 %v1823_v24  ;;  %v3379_v22 = vld [vmem:[%s3816_s20 + $0x8] sm:$0xff]   ;;  %v3380_v24 = vld [vmem:[%s3816_s20 + $0x10] sm:$0xff]  }
 0x88d   : > { %v1826_v27 = vsel %vm1316_vm4, %v1821_v25, -inf }
 0x88f   : > { %1507 = vadd.xlane.f32.xlu1 %v1506_v26  ;;  %v3382_v26 = vld [vmem:[%s3816_s20 + $0x20] sm:$0xff]  }
 0x890   : > { %1827 = vmax.xlane.f32.xlu0 %v1826_v27  ;;  %v3383_v27 = vld [vmem:[%s3816_s20 + $0x28] sm:$0xff]  }
 0x894   : > { %1504 = vadd.xlane.f32.xlu0 %v1503_v29 }
 0x898   : > { %1510 = vadd.xlane.f32.xlu0 %v1509_v31  ;;  %v3385_v31 = vld [vmem:[%s3816_s20 + $0x38] sm:$0xff]  }
 0x918   : > { %v1831_v45 = vpop.xlane.xlu1 %1830 }
 0x919   : > { %v1834_v32 = vsub.f32 %v1822_v14, %v1831_v45  ;;  %v1825_v56 = vpop.xlane.xlu0 %1824 }
 0x91a   : > { %v1832_v62 = vsub.f32 %v1820_v16, %v1825_v56 }
 0x91b   : > { %v1839_v46 = vmul.f32 1.442695, %v1834_v32 }
 0x91c   : > { %v1835_v33 = vmul.f32 1.442695, %v1832_v62  ;;  %v1508_v34 = vpop.xlane.xlu1 %1507 }
 0x91d   : > { %3462 = vpow2.f32 %v1839_v46  ;;  %v1828_v61 = vpop.xlane.xlu0 %1827 }
 0x91e   : > { %v1833_v35 = vsub.f32 %v1821_v25, %v1828_v61  ;;  %3464 = vpow2.f32 %v1835_v33  ;;  %v3381_v25 = vld [vmem:[%s3816_s20 + $0x18] sm:$0xff]  }
 0x91f   : > { %3466 = vrcp.f32 %v1508_v34 }
 0x920   : > { %v1837_v36 = vmul.f32 1.442695, %v1833_v35 }
 0x921   : > { %v1505_v37 = vpop.xlane.xlu0 %1504 }
 0x922   : > { %3468 = vpow2.f32 %v1837_v36 }
 0x923   : > { %3470 = vrcp.f32 %v1505_v37 }
 0x925   : > { %v1511_v54 = vpop.xlane.xlu0 %1510 }
 0x926   : > { %3472 = vrcp.f32 %v1511_v54 }
 0x927   : > { %v3463_v38 = vpop.eup %3462 }
 0x928   : > { %v1847_v39 = vsel %vm1316_vm4, %v3463_v38, 0.0  ;;  %v3465_v40 = vpop.eup %3464 }
 0x929   : > { %1848 = vadd.xlane.f32.xlu1 %v1847_v39  ;;  %v3467_v41 = vpop.eup %3466  ;;  %v1841_v43 = vsel %vm1316_vm4, %v3465_v40, 0.0 }
 0x92a   : > { %v1516_v50 = vmul.f32 %v3467_v41, %v3457_v19  ;;  %v3378_v19 = vld [vmem:[%s3816_s20] sm:$0xff]  }
 0x92c   : > { %v3469_v42 = vpop.eup %3468 }
 0x92d   : > { %v3471_v44 = vpop.eup %3470  ;;  %1842 = vadd.xlane.f32.xlu1 %v1841_v43  ;;  %v1844_v48 = vsel %vm1316_vm4, %v3469_v42, 0.0 }
 0x92e   : > { %1845 = vadd.xlane.f32.xlu0 %v1844_v48  ;;  %v1515_v49 = vmul.f32 %v3471_v44, %v3459_v28  ;;  %v3384_v28 = vld [vmem:[%s3816_s20 + $0x30] sm:$0xff]   ;;  %s4377_s20 = sld [smem:[#allocation28_spill]] (!%p2993_p1) }
 0x930   : > { %v1518_v52 = vpack.c.bf16 %v1516_v50, %v1515_v49  ;;  %v3473_v3 = vpop.eup %3472 }
 0x931   : > { %v1517_v7 = vmul.f32 %v3473_v3, %v3461_v30 }
 0x932   : > { %3160 = vmatprep.mubr.msk.bf16.mxu0 %vm1316_vm4, %v1518_v52 }
 0x933   : > { %v1519_v10 = vpack.c.bf16 %v1517_v7, %v1517_v7 }
 0x93e   : > { %1524 = vrot.lane.b32.xlu1 %v3955_v51, %s3610_s19 }
 0x942   : > { %1858 = vrot.lane.b32.xlu1 %v3947_v47, %s3612_s25 }
 0x944   : > { %1522 = vrot.lane.b32.xlu0 %v3947_v47, %s3610_s19 }
 0x946   : > { %1860 = vrot.lane.b32.xlu1 %v3955_v51, %s3612_s25 }
 0x9b6   : > { %v1849_v58 = vpop.xlane.xlu1 %1848 }
 0x9ba   : > { %v1843_v60 = vpop.xlane.xlu1 %1842 }
 0x9bb   : > { %3474 = vrcp.f32 %v1843_v60  ;;  %v1846_v63 = vpop.xlane.xlu0 %1845 }
 0x9bc   : > { %3476 = vrcp.f32 %v1846_v63 }
 0x9bd   : > { %3478 = vrcp.f32 %v1849_v58 }
 0x9be   : > { %v1525_v2 = vpop.permute.xlu1 %1524 }
 0x9bf   : > { %v1523_v4 = vpop.permute.xlu0 %1522  ;;  %v1534_v8 = vsel %vm1358_vm2, %v1525_v2, 0 }
 0x9c0   : > { %3156 = vmatprep.subr.bf16.mxu0 %v1523_v4 }
 0x9c1   : > { %3157 = vmatpush3.bf16.msra.mxu0 %v1523_v4 }
 0x9c2   : > { %3241 = vmatprep.subr.msk.bf16.mxu0 %vm1358_vm2, %v1525_v2  ;;  %v1859_v47 = vpop.permute.xlu1 %1858 }
 0x9c5   : > { %v3475_v51 = vpop.eup %3474  ;;  %3159 = vmatpush3.bf16.msra.mxu0 %v1534_v8  ;;  %v3498_v8 = vld [vmem:[#allocation2] sm:$0xff] }
 0x9c6   : > { %v3477_v9 = vpop.eup %3476  ;;  %3188 = vmatprep.subr.bf16.mxu0 %v1859_v47  ;;  %v1853_v11 = vmul.f32 %v3475_v51, %v3465_v40  ;;  %v1861_v14 = vpop.permute.xlu1 %1860 }
 0x9c7   : > { %v3479_v12 = vpop.eup %3478  ;;  %v1854_v13 = vmul.f32 %v3477_v9, %v3469_v42  ;;  %v1870_v17 = vsel %vm1358_vm2, %v1861_v14, 0 }
 0x9c8   : > { %3161 = vmatmul.mubr.msk.bf16.vlgmr.msra.gmra.mrb[12].mxu0 %vm1316_vm4, %v1519_v10  ;;  %v1855_v16 = vmul.f32 %v3479_v12, %v3463_v38  ;;  %v3499_v10 = vld [vmem:[#allocation2 + $0x8] sm:$0xff]  ;;  %v3500_v12 = vld [vmem:[#allocation2 + $0x10] sm:$0xff] }
 0x9c9   : > { %3189 = vmatpush3.bf16.msra.mxu0 %v1859_v47  ;;  %v1856_v15 = vpack.c.bf16 %v1854_v13, %v1853_v11 }
 0x9ca   : > { %3247 = vmatprep.subr.msk.bf16.mxu0 %vm1358_vm2, %v1861_v14  ;;  %v1857_v18 = vpack.c.bf16 %v1855_v16, %v1855_v16  ;;  %v3386_v14 = vld [vmem:[%s3840_s3] ss:$8 sps:$4 sm:$0xff]   ;;  %v3391_v16 = vld [vmem:[%s3840_s3 + $0x14] ss:$8 sps:$4 sm:$0xff]  }
 0x9cb   : > { %3192 = vmatprep.mubr.msk.bf16.mxu0 %vm1316_vm4, %v1856_v15  ;;  %v3388_v15 = vld [vmem:[%s3840_s3 + $0x4] ss:$8 sps:$4 sm:$0xff]  }
 0x9cc   : > { %2254 = vmatprep.subr.bf16.mxu1 %v3388_v15  ;;  %v3416_v15 = vld [vmem:[%s3850_s28 + $0x58] sm:$0xff]  }
 0x9cd   : > { %3191 = vmatpush3.bf16.msra.mxu0 %v1870_v17  ;;  %2255 = vmatpush1.bf16.msra.mxu1 %v3386_v14  ;;  %v3389_v17 = vld [vmem:[%s3840_s3 + $0x10] ss:$8 sps:$4 sm:$0xff]  }
 0x9ce   : > { %3196 = vmatprep.subr.bf16.mxu0 %v3378_v19  ;;  %2256 = vmatprep.subr.bf16.mxu1 %v3391_v16  ;;  %v3414_v14 = vld [vmem:[%s3850_s28 + $0x50] sm:$0xff]   ;;  %v3417_v16 = vld [vmem:[%s3850_s28 + $0x18] sm:$0xff]  }
 0x9d0   : > { %3193 = vmatmul.mubr.msk.bf16.vlgmr.msra.gmra.mrb[16].mxu0 %vm1316_vm4, %v1857_v18 }
 0x9d1   : > { %3197 = vmatpush3.bf16.msra.mxu0 %v3378_v19  ;;  %2257 = vmatpush1.bf16.msra.mxu1 %v3389_v17  ;;  %v3418_v17 = vld [vmem:[%s3850_s28 + $0x60] sm:$0xff]  }
 0x9d2   : > { %3198 = vmatprep.subr.bf16.mxu0 %v3379_v22 }
 0x9d5   : > { %3199 = vmatpush3.bf16.msra.mxu0 %v3379_v22 }
 0x9d6   : > { %3200 = vmatprep.subr.bf16.mxu0 %v3380_v24 }
 0x9d9   : > { %3201 = vmatpush3.bf16.msra.mxu0 %v3380_v24 }
 0x9da   : > { %3202 = vmatprep.subr.bf16.mxu0 %v3381_v25 }
 0x9dd   : > { %3203 = vmatpush3.bf16.msra.mxu0 %v3381_v25 }
 0x9de   : > { %3204 = vmatprep.subr.bf16.mxu0 %v3382_v26 }
 0x9e1   : > { %3205 = vmatpush3.bf16.msra.mxu0 %v3382_v26 }
 0x9e2   : > { %3206 = vmatprep.subr.bf16.mxu0 %v3383_v27 }
 0x9e5   : > { %3207 = vmatpush3.bf16.msra.mxu0 %v3383_v27 }
 0x9e6   : > { %3208 = vmatprep.subr.bf16.mxu0 %v3384_v28 }
 0x9e9   : > { %3209 = vmatpush3.bf16.msra.mxu0 %v3384_v28 }
 0x9ea   : > { %3210 = vmatprep.subr.bf16.mxu0 %v3385_v31 }
 0x9ed   : > { %3211 = vmatpush3.bf16.msra.mxu0 %v3385_v31 }
 0xa9b   : > { %v3162_v29 = vpop.f32.mrb[12].mxu0 }
 0xa9c   : > { %1927 = vrot.lane.b32.xlu1 %v3162_v29, %s3612_s25  ;;  %v1570_v30 = vpop.f32.mrb[13].mxu0 }
 0xa9d   : > { %v3163_v45 = vpop.f32.mrb[14].mxu0 }
 0xa9e   : > { %v1573_v32 = vpop.f32.mrb[15].mxu0 }
 0xa9f   : > { %v3331_v56 = vpack.i.bf16 %v1573_v32, %v1570_v30  ;;  %v3394_v32 = vld [vmem:[%s3840_s3 + $0x24] ss:$8 sps:$4 sm:$0xff]  }
 0xaa0   : > { %1939 = vrot.lane.b32.xlu1 %v4068_v0, %s3611_s24  ;;  %2258 = vmatprep.subr.bf16.mxu1 %v3394_v32 }
 0xaa1   : > { %3332 = vrot.lane.b32.xlu0 %v3331_v56, %s3612_s25  ;;  %v3392_v56 = vld [vmem:[%s3840_s3 + $0x20] ss:$8 sps:$4 sm:$0xff]  }
 0xaa2   : > { %2259 = vmatpush1.bf16.msra.mxu1 %v3392_v56 }
 0xaa3   : > { %v3194_v62 = vpop.f32.mrb[16].mxu0 }
 0xaa4   : > { %1951 = vrot.lane.b32.xlu1 %v3194_v62, %s3610_s19  ;;  %v1906_v46 = vpop.f32.mrb[17].mxu0  ;;  %v3397_v62 = vld [vmem:[%s3840_s3 + $0x34] ss:$8 sps:$4 sm:$0xff]  }
 0xaa5   : > { %3337 = vrot.lane.b32.xlu0 %v3336_v6, %s3611_s24  ;;  %v3195_v33 = vpop.f32.mrb[18].mxu0  ;;  %2260 = vmatprep.subr.bf16.mxu1 %v3397_v62 }
 0xaa6   : > { %v1909_v61 = vpop.f32.mrb[19].mxu0  ;;  %v3400_v33 = vld [vmem:[%s3840_s3 + $0x44] ss:$8 sps:$4 sm:$0xff]  }
 0xaa7   : > { %v3341_v34 = vpack.i.bf16 %v1909_v61, %v1906_v46  ;;  %v3395_v46 = vld [vmem:[%s3840_s3 + $0x30] ss:$8 sps:$4 sm:$0xff]   ;;  %v3398_v61 = vld [vmem:[%s3840_s3 + $0x40] ss:$8 sps:$4 sm:$0xff]  }
 0xaa8   : > { %2261 = vmatpush1.bf16.msra.mxu1 %v3395_v46 }
 0xaa9   : > { %3342 = vrot.lane.b32.xlu0 %v3341_v34, %s3610_s19  ;;  %2262 = vmatprep.subr.bf16.mxu1 %v3400_v33  ;;  %v3403_v34 = vld [vmem:[%s3840_s3 + $0x54] ss:$8 sps:$4 sm:$0xff]   ;;  %s4376_s19 = sld [smem:[#allocation26_spill]] (!%p2993_p1) }
 0xaac   : > { %2263 = vmatpush1.bf16.msra.mxu1 %v3398_v61 }
 0xaad   : > { %2264 = vmatprep.subr.bf16.mxu1 %v3403_v34 }
 0xb0e   : > { %v1928_v35 = vpop.permute.xlu1 %1927 }
 0xb0f   : > { %v1958_v42 = vsel %vm1252_vm1, %v4018_v55, %v1928_v35  ;;  %v3401_v35 = vld [vmem:[%s3840_s3 + $0x50] ss:$8 sps:$4 sm:$0xff]  }
 0xb10   : > { %2265 = vmatpush1.bf16.msra.mxu1 %v3401_v35 }
 0xb12   : > { %v1940_v0 = vpop.permute.xlu1 %1939 }
 0xb13   : > { %v3333_v36 = vpop.permute.xlu0 %3332  ;;  %v1962_v5 = vsel %vm1959_vm5, %v1958_v42, %v1940_v0  ;;  %v3404_v0 = vld [vmem:[%s3840_s3 + $0x60] ss:$8 sps:$4 sm:$0xff]  }
 0xb14   : > { %v3335_v38 = vunpack.i.h.bf16 %v3333_v36  ;;  %v3334_v39 = vunpack.i.l.bf16 %v3333_v36  ;;  %v3406_v36 = vld [vmem:[%s3840_s3 + $0x64] ss:$8 sps:$4 sm:$0xff]  }
 0xb15   : > { %2266 = vmatprep.subr.bf16.mxu1 %v3406_v36 }
 0xb16   : > { %v1952_v1 = vpop.permute.xlu1 %1951  ;;  %v1957_v43 = vsel %vm1252_vm1, %v4022_v59, %v3335_v38  ;;  %v1956_v44 = vsel %vm1252_vm1, %v4020_v57, %v3334_v39  ;;  %v2949_v59 = vld [vmem:[%s4370_s7] ss:$0 sm:$0xff]  ;;  %2267 = vmatpush1.bf16.msra.mxu1 %v3404_v0  ;;  %v3407_v38 = vld [vmem:[%s3840_s3 + $0x70] ss:$8 sps:$4 sm:$0xff]  }
 0xb17   : > { %v3338_v37 = vpop.permute.xlu0 %3337  ;;  %v1966_v50 = vsel %vm1963_vm6, %v1962_v5, %v1952_v1 }
 0xb18   : > { %v3340_v40 = vunpack.i.h.bf16 %v3338_v37  ;;  %v3339_v41 = vunpack.i.l.bf16 %v3338_v37  ;;  %v1968_v63 = vpack.c.bf16 %v1966_v50, %v1966_v50  ;;  %v3409_v37 = vld [vmem:[%s3840_s3 + $0x74] ss:$8 sps:$4 sm:$0xff]   ;;  %v2958_v50 = vld [vmem:[%s4371_s21] ss:$0 sm:$0xff] }
 0xb19   : > { %2268 = vmatprep.subr.bf16.mxu1 %v3409_v37 }
 0xb1a   : > { %v1960_v52 = vsel %vm1959_vm5, %v1956_v44, %v3339_v41  ;;  %v1961_v54 = vsel %vm1959_vm5, %v1957_v43, %v3340_v40  ;;  %2269 = vmatpush1.bf16.msra.mxu1 %v3407_v38 }
 0xb1b   : > { %v3343_v6 = vpop.permute.xlu0 %3342 }
 0xb1c   : > { %v3345_v48 = vunpack.i.h.bf16 %v3343_v6  ;;  %v3344_v49 = vunpack.i.l.bf16 %v3343_v6 }
 0xb1e   : > { %v1964_v55 = vsel %vm1963_vm6, %v1960_v52, %v3344_v49  ;;  %v1965_v58 = vsel %vm1963_vm6, %v1961_v54, %v3345_v48 }
 0xb1f   : > { %v1967_v60 = vpack.c.bf16 %v1965_v58, %v1964_v55 }
 0xb21   : > { %3212 = vmatprep.mubr.bf16.mxu0 %v1967_v60  ;;  %v2959_v60 = vld [vmem:[%s4372_s2] ss:$0 sm:$0xff] }
 0xb22   : > { %3213 = vmatmul.mubr.bf16.vlgmr.msra.gmra.mrb[20].mxu0 %v1968_v63 }
 0xbf5   : > { %v3214_v2 = vpop.f32.mrb[20].mxu0 }
 0xbf6   : > { %v2074_v57 = vpop.f32.mrb[21].mxu0  ;;  %v2083_v47 = vadd.f32 %v3214_v2, %v2949_v59 }
 0xbf7   : > { %v2075_v3 = vadd.f32 %v2949_v59, %v2074_v57  ;;  %v3215_v4 = vpop.f32.mrb[22].mxu0 }
 0xbf8   : > { %v2077_v7 = vpop.f32.mrb[23].mxu0  ;;  %v4144_v13 = vadd.f32 %v3500_v12, %v2083_v47  ;;  %v3413_v12 = vld [vmem:[%s3850_s28 + $0x8] sm:$0xff]  }
 0xbf9   : > { %v4139_v51 = vadd.f32 %v3498_v8, %v2075_v3  ;;  %v2078_v9 = vadd.f32 %v2949_v59, %v2077_v7  ;;  %v3410_v8 = vld [vmem:[%s3850_s28 + $0x40] sm:$0xff]  }
 0xbfa   : > { %3065 = vmatprep.subr.bf16.mxu0 %v3410_v8 }
 0xbfb   : > { %v4141_v11 = vadd.f32 %v3499_v10, %v2078_v9  ;;  %2093 = vadd.xlane.f32.xlu0 %v4139_v51  ;;  %v3411_v9 = vld [vmem:[%s3850_s28] sm:$0xff]   ;;  %v3412_v10 = vld [vmem:[%s3850_s28 + $0x48] sm:$0xff]  }
 0xbfc   : > { %3066 = vmatpush3.bf16.msra.mxu0 %v3411_v9 }
 0xbfd   : > { %2095 = vadd.xlane.f32.xlu1 %v4141_v11  ;;  %3067 = vmatprep.subr.bf16.mxu0 %v3412_v10 }
 0xbff   : > { %2097 = vadd.xlane.f32.xlu0 %v4144_v13 }
 0xc00   : > { %3068 = vmatpush3.bf16.msra.mxu0 %v3413_v12 }
 0xc01   : > { %3069 = vmatprep.subr.bf16.mxu0 %v3414_v14 }
 0xc88   : > { %v2094_v18 = vpop.xlane.xlu0 %2093 }
 0xc89   : > { %v2099_v19 = vmul.f32 0.0078125, %v2094_v18  ;;  %v3419_v18 = vld [vmem:[%s3850_s28 + $0x20] sm:$0xff]  }
 0xc8a   : > { %v2096_v22 = vpop.xlane.xlu1 %2095 }
 0xc8b   : > { %v2102_v24 = vsub.f32 %v4139_v51, %v2099_v19  ;;  %v2100_v25 = vmul.f32 0.0078125, %v2096_v22  ;;  %v3420_v19 = vld [vmem:[%s3850_s28 + $0x68] sm:$0xff]  }
 0xc8c   : > { %v2098_v26 = vpop.xlane.xlu0 %2097  ;;  %v3421_v22 = vld [vmem:[%s3850_s28 + $0x28] sm:$0xff]  }
 0xc8d   : > { %v2103_v27 = vsub.f32 %v4141_v11, %v2100_v25  ;;  %v2101_v28 = vmul.f32 0.0078125, %v2098_v26  ;;  %v2105_v29 = vmul.f32 %v2102_v24, %v2102_v24  ;;  %v3423_v25 = vld [vmem:[%s3850_s28 + $0x30] sm:$0xff]   ;;  %v3424_v26 = vld [vmem:[%s3850_s28 + $0x78] sm:$0xff]  }
 0xc8f   : > { %v2104_v30 = vsub.f32 %v4144_v13, %v2101_v28  ;;  %2108 = vadd.xlane.f32.xlu0 %v2105_v29  ;;  %v2106_v31 = vmul.f32 %v2103_v27, %v2103_v27  ;;  %v2162_v28 = vld [vmem:[%s3845_s23] sm:$0x3] }
 0xc90   : > { %v2167_v29 = vrot.slane %v2162_v28, %v1000_v21 }
 0xc91   : > { %v2107_v45 = vmul.f32 %v2104_v30, %v2104_v30 }
 0xc93   : > { %2110 = vadd.xlane.f32.xlu0 %v2106_v31  ;;  %2112 = vadd.xlane.f32.xlu1 %v2107_v45 }
 0xd1c   : > { %v2109_v39 = vpop.xlane.xlu0 %2108 }
 0xd1d   : > { %v2114_v40 = vmul.f32 0.0078125, %v2109_v39 }
 0xd1f   : > { %v2117_v41 = vadd.f32 1e-12, %v2114_v40 }
 0xd20   : > { %v2113_v42 = vpop.xlane.xlu1 %2112  ;;  %v2111_v1 = vpop.xlane.xlu0 %2110 }
 0xd21   : > { %3480 = vrsqrt.f32 %v2117_v41  ;;  %v2116_v5 = vmul.f32 0.0078125, %v2113_v42  ;;  %v2115_v6 = vmul.f32 0.0078125, %v2111_v1 }
 0xd23   : > { %v2119_v43 = vadd.f32 1e-12, %v2116_v5  ;;  %v2118_v44 = vadd.f32 1e-12, %v2115_v6 }
 0xd25   : > { %3482 = vrsqrt.f32 %v2119_v43 }
 0xd26   : > { %3484 = vrsqrt.f32 %v2118_v44 }
 0xd2b   : > { %v3481_v48 = vpop.eup %3480 }
 0xd2c   : > { %v2123_v49 = vmul.f32 %v3481_v48, %v2102_v24  ;;  %v3422_v24 = vld [vmem:[%s3850_s28 + $0x70] sm:$0xff]  }
 0xd2e   : > { %v2132_v58 = vmul.f32 %v2958_v50, %v2123_v49 }
 0xd2f   : > { %v3483_v52 = vpop.eup %3482 }
 0xd30   : > { %v3485_v54 = vpop.eup %3484  ;;  %v2125_v59 = vmul.f32 %v3483_v52, %v2104_v30  ;;  %v2141_v2 = vadd.f32 %v2959_v60, %v2132_v58  ;;  %v2171_v30 = vrot.slane %v2162_v28, %v1004_v23 }
 0xd31   : > { %v2124_v55 = vmul.f32 %v3485_v54, %v2103_v27  ;;  %v3425_v27 = vld [vmem:[%s3850_s28 + $0x38] sm:$0xff]  }
 0xd32   : > { %v2134_v4 = vmul.f32 %v2958_v50, %v2125_v59 }
 0xd33   : > { %v2133_v63 = vmul.f32 %v2958_v50, %v2124_v55 }
 0xd34   : > { %v2143_v7 = vadd.f32 %v2959_v60, %v2134_v4 }
 0xd35   : > { %v2142_v57 = vadd.f32 %v2959_v60, %v2133_v63 }
 0xd36   : > { %v2145_v47 = vpack.c.bf16 %v2143_v7, %v2143_v7 }
 0xd37   : > { %v2144_v3 = vpack.c.bf16 %v2142_v57, %v2141_v2 }
 0xd39   : > { %2287 = vmatmul.mubr.bf16.vlgmr.msra.gmra.mrb[24].mxu1 %v2144_v3 }
 0xd3a   : > { %2296 = vmatprep.mubr.bf16.mxu1 %v3609_v53  ;;  %v3415_v53 = vld [vmem:[%s3850_s28 + $0x10] sm:$0xff]  }
 0xd3b   : > { %3070 = vmatpush3.bf16.msra.mxu0 %v3415_v53 }
 0xd3c   : > { %3071 = vmatprep.subr.bf16.mxu0 %v3416_v15 }
 0xd3f   : > { %3072 = vmatpush3.bf16.msra.mxu0 %v3417_v16 }
 0xd40   : > { %3073 = vmatprep.subr.bf16.mxu0 %v3418_v17 }
 0xd41   : > { %2297 = vmatmul.mubr.bf16.gmra.mrb[28].mxu1 %v2145_v47 }
 0xd43   : > { %3074 = vmatpush3.bf16.msra.mxu0 %v3419_v18 }
 0xd44   : > { %3075 = vmatprep.subr.bf16.mxu0 %v3420_v19 }
 0xd47   : > { %3076 = vmatpush3.bf16.msra.mxu0 %v3421_v22 }
 0xd48   : > { %3077 = vmatprep.subr.bf16.mxu0 %v3422_v24 }
 0xd4b   : > { %3078 = vmatpush3.bf16.msra.mxu0 %v3423_v25 }
 0xd4c   : > { %3079 = vmatprep.subr.bf16.mxu0 %v3424_v26 }
 0xd4f   : > { %3080 = vmatpush3.bf16.msra.mxu0 %v3425_v27 }
 0xe0c   : > { %v2288_v31 = vpop.f32.mrb[24].mxu1 }
 0xe0d   : > { %v2289_v45 = vadd.f32 %v2288_v31, %v2167_v29  ;;  %v2290_v32 = vpop.f32.mrb[25].mxu1 }
 0xe0e   : > { %v2291_v56 = vadd.f32 %v2290_v32, %v2171_v30  ;;  %v2292_v62 = vpop.f32.mrb[26].mxu1 }
 0xe0f   : > { %v2305_v46 = vmul.f32 %v2289_v45, %v2289_v45  ;;  %v2293_v33 = vadd.f32 %v2292_v62, %v2167_v29  ;;  %v2294_v61 = vpop.f32.mrb[27].mxu1 }
 0xe10   : > { %v2306_v34 = vmul.f32 %v2291_v56, %v2291_v56  ;;  %v2295_v35 = vadd.f32 %v2294_v61, %v2171_v30 }
 0xe11   : > { %v2311_v36 = vmul.f32 %v2305_v46, %v2289_v45  ;;  %v2307_v0 = vmul.f32 %v2293_v33, %v2293_v33 }
 0xe12   : > { %v2312_v37 = vmul.f32 %v2306_v34, %v2291_v56  ;;  %v2308_v38 = vmul.f32 %v2295_v35, %v2295_v35 }
 0xe13   : > { %v2317_v39 = vmul.f32 0.044715, %v2311_v36  ;;  %v2313_v40 = vmul.f32 %v2307_v0, %v2293_v33 }
 0xe14   : > { %v2318_v21 = vmul.f32 0.044715, %v2312_v37  ;;  %v2314_v41 = vmul.f32 %v2308_v38, %v2295_v35  ;;  %v2298_v20 = vpop.f32.mrb[28].mxu1 }
 0xe15   : > { %v2323_v23 = vadd.f32 %v2317_v39, %v2289_v45  ;;  %v2319_v42 = vmul.f32 0.044715, %v2313_v40  ;;  %v2299_v1 = vadd.f32 %v2298_v20, %v2167_v29  ;;  %v2300_v5 = vpop.f32.mrb[29].mxu1 }
 0xe16   : > { %v2324_v6 = vadd.f32 %v2318_v21, %v2291_v56  ;;  %v2320_v43 = vmul.f32 0.044715, %v2314_v41  ;;  %v2301_v44 = vadd.f32 %v2300_v5, %v2171_v30  ;;  %v2302_v48 = vpop.f32.mrb[30].mxu1 }
 0xe17   : > { %v2329_v49 = vmul.f32 0.7978846, %v2323_v23  ;;  %v2325_v50 = vadd.f32 %v2319_v42, %v2293_v33  ;;  %v2309_v52 = vmul.f32 %v2299_v1, %v2299_v1  ;;  %v2303_v54 = vpop.f32.mrb[31].mxu1 }
 0xe18   : > { %v2330_v55 = vmul.f32 0.7978846, %v2324_v6  ;;  %v2326_v58 = vadd.f32 %v2320_v43, %v2295_v35  ;;  %v2310_v60 = vmul.f32 %v2301_v44, %v2301_v44  ;;  %v3502_v54 = vld [vmem:[%s4374_s15 + $0x8] sm:$0xff] (!%p2993_p1)  }
 0xe19   : > { %3486 = vtanh.f32 %v2329_v49  ;;  %v2331_v63 = vmul.f32 0.7978846, %v2325_v50  ;;  %v2315_v59 = vmul.f32 %v2309_v52, %v2299_v1 }
 0xe1a   : > { %3488 = vtanh.f32 %v2330_v55  ;;  %v2332_v2 = vmul.f32 0.7978846, %v2326_v58  ;;  %v2316_v57 = vmul.f32 %v2310_v60, %v2301_v44 }
 0xe1b   : > { %3490 = vtanh.f32 %v2331_v63  ;;  %v2321_v3 = vmul.f32 0.044715, %v2315_v59  ;;  %v3503_v59 = vld [vmem:[%s4374_s15 + $0x10] sm:$0xff] (!%p2993_p1)  }
 0xe1c   : > { %3492 = vtanh.f32 %v2332_v2  ;;  %v2322_v4 = vmul.f32 0.044715, %v2316_v57  ;;  %v3504_v2 = vld [vmem:[%s4374_s15 + $0x18] sm:$0xff] (!%p2993_p1)   ;;  %v3505_v57 = vld [vmem:[%s4374_s15 + $0x20] sm:$0xff] (!%p2993_p1)  }
 0xe1d   : > { %v2327_v7 = vadd.f32 %v2321_v3, %v2299_v1  ;;  %v3506_v3 = vld [vmem:[%s4374_s15 + $0x28] sm:$0xff] (!%p2993_p1)  }
 0xe1e   : > { %v2328_v47 = vadd.f32 %v2322_v4, %v2301_v44  ;;  %v3507_v4 = vld [vmem:[%s4374_s15 + $0x30] sm:$0xff] (!%p2993_p1)  }
 0xe1f   : > { %v2333_v8 = vmul.f32 0.7978846, %v2327_v7  ;;  %v3508_v7 = vld [vmem:[%s4374_s15 + $0x38] sm:$0xff] (!%p2993_p1)  }
 0xe20   : > { %v2334_v9 = vmul.f32 0.7978846, %v2328_v47 }
 0xe21   : > { %3494 = vtanh.f32 %v2333_v8 }
 0xe22   : > { %3496 = vtanh.f32 %v2334_v9 }
 0xe23   : > { %v3487_v10 = vpop.eup %3486 }
 0xe24   : > { %v3489_v12 = vpop.eup %3488  ;;  %v2341_v14 = vadd.f32 1.0, %v3487_v10 }
 0xe25   : > { %v3491_v53 = vpop.eup %3490  ;;  %v2342_v15 = vadd.f32 1.0, %v3489_v12 }
 0xe26   : > { %v3493_v16 = vpop.eup %3492  ;;  %v2347_v17 = vmul.f32 0.5, %v2341_v14  ;;  %v2343_v18 = vadd.f32 1.0, %v3491_v53  ;;  %v2557_v53 = vld [vmem:[%s4376_s19] sm:$0x1] (!%p2993_p1) }
 0xe27   : > { %v2344_v19 = vadd.f32 1.0, %v3493_v16  ;;  %v2348_v22 = vmul.f32 0.5, %v2342_v15 }
 0xe28   : > { %v2349_v24 = vmul.f32 0.5, %v2343_v18  ;;  %v2353_v26 = vmul.f32 %v2347_v17, %v2289_v45  ;;  %v2591_v18 = vld [vmem:[%s4377_s20] sm:$0x1] (!%p2993_p1) }
 0xe29   : > { %v2350_v25 = vmul.f32 0.5, %v2344_v19  ;;  %v2354_v29 = vmul.f32 %v2348_v22, %v2291_v56  ;;  %v2976_v56 = vld [vmem:[%s809_s22] ss:$0 sm:$0xff]  ;;  %s4375_s22 = sld [smem:[#allocation25_spill]] (!%p2993_p1) }
 0xe2a   : > { %v2355_v27 = vmul.f32 %v2349_v24, %v2293_v33 }
 0xe2b   : > { %v3495_v28 = vpop.eup %3494  ;;  %v2356_v30 = vmul.f32 %v2350_v25, %v2295_v35 }
 0xe2c   : > { %v3497_v31 = vpop.eup %3496  ;;  %v2359_v32 = vpack.c.bf16 %v2355_v27, %v2353_v26  ;;  %v2345_v62 = vadd.f32 1.0, %v3495_v28 }
 0xe2d   : > { %v2360_v46 = vpack.c.bf16 %v2356_v30, %v2354_v29  ;;  %v2346_v61 = vadd.f32 1.0, %v3497_v31 }
 0xe2e   : > { %v2351_v34 = vmul.f32 0.5, %v2345_v62 }
 0xe2f   : > { %2530 = vmatprep.mubr.bf16.mxu0 %v2360_v46  ;;  %v2352_v36 = vmul.f32 0.5, %v2346_v61  ;;  %v2556_v12 = vld [vmem:[%s4375_s22] sm:$0x1] (!%p2993_p1) }
 0xe30   : > { %2531 = vmatmul.mubr.bf16.vlgmr.msra.gmra.mrb[24].mxu0 %v2359_v32  ;;  %v2357_v37 = vmul.f32 %v2351_v34, %v2299_v1 }
 0xe31   : > { %v2358_v0 = vmul.f32 %v2352_v36, %v2301_v44 }
 0xe32   : > { %v2361_v39 = vpack.c.bf16 %v2357_v37, %v2357_v37 }
 0xe33   : > { %v2362_v38 = vpack.c.bf16 %v2358_v0, %v2358_v0 }
 0xe35   : > { %2538 = vmatprep.mubr.bf16.mxu0 %v2362_v38 }
 0xe38   : > { %2539 = vmatmul.mubr.bf16.gmra.mrb[28].mxu0 %v2361_v39 }
 0xf03   : > { %v3081_v45 = vpop.f32.mrb[24].mxu0 }
 0xf04   : > { %v3082_v33 = vpop.f32.mrb[25].mxu0 }
 0xf05   : > { %v3083_v35 = vadd.f32 %v3082_v33, %v3081_v45  ;;  %v3084_v40 = vpop.f32.mrb[26].mxu0 }
 0xf06   : > { %v3085_v21 = vpop.f32.mrb[27].mxu0 }
 0xf07   : > { %v2533_v41 = vadd.f32 %v3083_v35, %v2976_v56  ;;  %v3086_v20 = vadd.f32 %v3085_v21, %v3084_v40 }
 0xf09   : > { %v2546_v23 = vadd.f32 %v2533_v41, %v4139_v51  ;;  %v2536_v42 = vadd.f32 %v3086_v20, %v2976_v56  ;;  %v3501_v51 = vld [vmem:[%s4374_s15] sm:$0xff] (!%p2993_p1)  }
 0xf0b   : > { %2549 = vst [vmem:[#allocation2] sm:$0xff] %v2546_v23  ;;  %v2547_v1 = vadd.f32 %v2536_v42, %v4141_v11  ;;  %v3087_v5 = vpop.f32.mrb[28].mxu0  ;;  %v2559_v52 = vsel (!%p2993_p1), %vm2558_vm7, %v2546_v23, 0.0  ;;  %v3613_v11 = vmov (!%p2993_p1), 0.0  }
 0xf0c   : > { %v3088_v6 = vpop.f32.mrb[29].mxu0  ;;  %2560 = vadd.xlane.f32.xlu0 (!%p2993_p1), %v2559_v52  ;;  %3216 = vmatprep.subr.bf16.mxu0 (!%p2993_p1), %v3613_v11 }
 0xf0d   : > { %2550 = vst [vmem:[#allocation2 + $0x8] sm:$0xff] %v2547_v1  ;;  %v3089_v43 = vadd.f32 %v3088_v6, %v3087_v5  ;;  %v3090_v44 = vpop.f32.mrb[30].mxu0  ;;  %2555 = sbr.rel (%p2993_p1) target bundleno = 4392 (0x1128), region = 104  ;;  %3217 = vmatpush3.bf16.msra.mxu0 (!%p2993_p1), %v3501_v51  ;;  %3232 = vmatprep.mubr.msk.bf16.mxu0 (!%p2993_p1), %vm3614_vm8, %v3613_v11 }
 0xf0e   : > { %v3091_v48 = vpop.f32.mrb[31].mxu0  ;;  %3218 = vmatprep.subr.bf16.mxu0 (!%p2993_p1), %v3613_v11 }
 0xf0f   : > { %v2541_v49 = vadd.f32 %v3089_v43, %v2976_v56 }
 0xf11   : > { %v2548_v50 = vadd.f32 %v2541_v49, %v4144_v13  ;;  %3219 = vmatpush3.bf16.msra.mxu0 (!%p2993_p1), %v3502_v54 }
 0xf12   : > { %3220 = vmatprep.subr.bf16.mxu0 (!%p2993_p1), %v3613_v11 }
 0xf13   : > { %2551 = vst [vmem:[#allocation2 + $0x10] sm:$0xff] %v2548_v50 }
 0xf15   : > { %3221 = vmatpush3.bf16.msra.mxu0 %v3503_v59 }
 0xf16   : > { %3222 = vmatprep.subr.bf16.mxu0 %v3613_v11 }
 0xf19   : > { %3223 = vmatpush3.bf16.msra.mxu0 %v3504_v2 }
 0xf1a   : > { %3224 = vmatprep.subr.bf16.mxu0 %v3613_v11 }
 0xf1d   : > { %3225 = vmatpush3.bf16.msra.mxu0 %v3505_v57 }
 0xf1e   : > { %3226 = vmatprep.subr.bf16.mxu0 %v3613_v11 }
 0xf21   : > { %3227 = vmatpush3.bf16.msra.mxu0 %v3506_v3 }
 0xf22   : > { %3228 = vmatprep.subr.bf16.mxu0 %v3613_v11 }
 0xf25   : > { %3229 = vmatpush3.bf16.msra.mxu0 %v3507_v4 }
 0xf26   : > { %3230 = vmatprep.subr.bf16.mxu0 %v3613_v11 }
 0xf29   : > { %3231 = vmatpush3.bf16.msra.mxu0 %v3508_v7 }
 0xf99   : > { %v2561_v13 = vpop.xlane.xlu0 %2560 }
 0xf9a   : > { %v2562_v55 = vmul.f32 0.0078125, %v2561_v13 }
 0xf9c   : > { %v2563_v58 = vsub.f32 %v2546_v23, %v2562_v55 }
 0xf9e   : > { %v2564_v60 = vmul.f32 %v2563_v58, %v2563_v58 }
 0xfa0   : > { %v2565_v63 = vsel %vm2558_vm7, %v2564_v60, 0.0 }
 0xfa1   : > { %2566 = vadd.xlane.f32.xlu0 %v2565_v63 }
0x102e   : > { %v2567_v47 = vpop.xlane.xlu0 %2566 }
0x102f   : > { %v2568_v8 = vmul.f32 0.0078125, %v2567_v47 }
0x1031   : > { %v2569_v9 = vadd.f32 1e-12, %v2568_v8 }
0x1033   : > { %3509 = vrsqrt.f32 %v2569_v9 }
0x103d   : > { %v3510_v10 = vpop.eup %3509 }
0x103e   : > { %v2571_v14 = vmul.f32 %v3510_v10, %v2563_v58 }
0x1040   : > { %v2572_v15 = vmul.f32 %v2571_v14, %v2556_v12 }
0x1042   : > { %v2573_v16 = vadd.f32 %v2572_v15, %v2557_v53 }
0x1044   : > { %v2574_v17 = vpack.c.bf16 %v2573_v16, %v2573_v16 }
0x1046   : > { %3233 = vmatmul.mubr.bf16.vlgmr.msra.gmra.mrb[0].mxu0 %v2574_v17 }
0x1119   : > { %v2674_v19 = vpop.f32.mrb[0].mxu0 }
0x111a   : > { %v2675_v22 = vadd.f32 %v2674_v19, %v2591_v18  ;;  %v3234_v24 = vpop.f32.mrb[1].mxu0 }
0x111b   : > { %v2677_v25 = vpop.f32.mrb[2].mxu0 }
0x111c   : > { %3511 = vtanh.f32 %v2675_v22  ;;  %v3235_v26 = vpop.f32.mrb[3].mxu0 }
0x1126   : > { %v3512_v27 = vpop.eup %3511 }
0x1127   : > { %2681 = vst [vmem:[%s3858_s17] sm:$0x1] %v3512_v27 }
0x1128 PF: > { %s4378_s18 = sld [smem:[#allocation9_spill]]  ;;  %s4380_s1 = sld [smem:[#allocation29_spill]] }
0x1129   : > { %s2695_s23 = sshll.u32 %s3858_s17, 4  ;;  %s4382_s28 = sand.u32 1, %s3583_s30   ;;  %s2696_s23 = int_to_ptr.vmem [resolvable:$true] %s2695_s23 }
0x112a   : > { %s2683_s0 = scalar_lea.sflag [#allocation4], %s4382_s28  ;;  %s3513_s22 = scalar_lea.vmem %s2696_s23, 16 }
0x112b   : > { %p3514_p2 = scmp.ne.s32.totalorder %s2696_s23, %s3513_s22  ;;  %s3615_s5 = smov [#allocation3]  }
0x112c   : > { %s3517_s6 = sshll.u32 %s3615_s5, 4  ;;  %s3518_s6 = int_to_ptr.vmem [resolvable:$false] %s3517_s6 }
0x112d   : > { %p3515_p4 = pnand %p3514_p2, %p3765_p3  ;;  %s3519_s19 = scalar_lea.vmem %s3518_s6, 32 }
0x112e   : > { %s3002_s26 = sshll.u32 %s4378_s18, 4  ;;  %s4381_s29 = smov %s4380_s1 }
0x112f   : > { %s4246_s2 = scalar_lea.hbm %s4380_s1, %s3002_s26  ;;  %p3516_p5 = pneg %p3515_p4 }
0x1130   : > { %p3520_p6 = scmp.lt.s32.totalorder %s2696_s23, %s3518_s6  ;;  %p3521_p7 = scmp.lt.s32.totalorder %s3519_s19, %s3513_s22 }
0x1132   : > { %p3522_p8 = por %p3521_p7, %p3520_p6 }
0x1134   : > { %p3523_p10 = pnand %p3522_p8, %p3516_p5 }
0x1136   : > { %3526 = shalt.err (!%p3523_p10)
}
0x1137   : > { %s3527_s17 = scalar_lea.hbm %s4246_s2, 16  ;;  %s3531_s20 = scalar_lea.hbm %s4381_s29, 32 }
0x1138   : > { %p3528_p11 = scmp.ne.s32.totalorder %s4246_s2, %s3527_s17  ;;  %p3532_p0 = scmp.lt.u32.totalorder %s4246_s2, %s4381_s29 }
0x1139   : > { %p3533_p1 = scmp.lt.u32.totalorder %s3531_s20, %s3527_s17  ;;  %p3535_p4 = scmp.lt.u32.totalorder %s3527_s17, %s4246_s2 }
0x113a   : > { %p3529_p12 = pnand %p3528_p11, %p3765_p3 }
0x113b   : > { %p3534_p2 = por %p3533_p1, %p3532_p0 }
0x113c   : > { %p3530_p13 = pneg %p3529_p12 }
0x113d   : > { %p3536_p5 = por %p3535_p4, %p3534_p2 }
0x113f   : > { %p3537_p6 = pnand %p3536_p5, %p3530_p13 }
0x1141   : > { %3540 = shalt.err (!%p3537_p6)
}
0x1142   : > { %3251 = dma.vmem_to_hbm [thread:$0]  (%p3765_p3), %s2696_s23, 16, %s4246_s2, %s2683_s0  }
0x1143 PF: > { %s4383_s3 = sld [smem:[#allocation12_spill]]  ;;  %s4384_s21 = sld [smem:[#allocation6_spill]] }
0x1149   : > { %p3257_p7 = scmp.ge.s32.totalorder %s4383_s3, 2  ;;  %s2707_s28 = sand.u32 1, %s4384_s21  }
0x114a   : > { %s2708_s22 = scalar_lea.sflag [#allocation4], %s2707_s28 }
0x114b   : > { %p3254_p8 = pnand %p3257_p7, %p3775_p9 }
0x114d   : > { %3574 = dma.done.wait (!%p3254_p8), %s2708_s22, 16  }
0x114e   : > { %3576 = vsyncadd (!%p3254_p8), %s2708_s22, 4294967280  ;;  %s32_s23 = sadd.s32 1, %s4383_s3   ;;  %s4386_s5 = sld [smem:[#allocation7_spill]] }
0x114f   : > { %p29_p10 = scmp.ge.s32.totalorder %s32_s23, 6   ;;  %s4387_s20 = sld [smem:[#allocation17_spill]] }
0x1150   : > { %s4388_s21 = sld [smem:[#allocation10_spill]]  ;;  %s4389_s1 = sld [smem:[#allocation11_spill]] }
0x1151   : > { %s4390_s22 = sld [smem:[#allocation13_spill]]  ;;  %s4391_s2 = sld [smem:[#allocation15_spill]] }
0x1152   : > { %s4392_s0 = smov %s3583_s30  ;;  %31 = sbr.rel (!%p29_p10) target bundleno = 18 (0x12), region = 175 }
0x1154   : > { %s4393_s30 = smov %s4386_s5 }
0x1159   :  { %2712 = vsyncpa [#allocation4], 1 }
0x115a   :  { %2714 = vsyncpa [#allocation4 + $0x1], 1 }

</bundles_post_ra>
